<compile_context>
chip_gen: v5e
topology: v5e:2x2
jax: 0.10.0
libtpu: 0.0.40
codegen_flags: <defaults>
</compile_context>

<pallas_src>
import functools

import jax
import jax.numpy as jnp
from jax import lax
from jax.experimental import pallas as pl
from jax.experimental.pallas import tpu as pltpu


def set_padding_size(kernel_size, dilation=1):
    kernel_size = kernel_size + (kernel_size - 1) * (dilation - 1)
    return (kernel_size - 1) // 2


def _cafm_kernel(w_ref, b_ref, x_ref, out_ref, xpad_ref, *, H, W, K, P, Gt):
    # w_ref    : (C*2*K*K,)  f32 SMEM -- torch weight (C_out, 2, K, K) * gamma, flat
    # b_ref    : (C,)        f32 SMEM -- bias * gamma
    # x_ref    : (1, 2*Gt, H, W) VMEM -- this batch element, this block of Gt groups
    # out_ref  : (1, 2*Gt, H, W) VMEM
    # xpad_ref : (2, H+2P, W+2P) f32 VMEM scratch (halo tile, interior rebuilt per group)
    KK = K * K
    gb = pl.program_id(1)
    Hp, Wp = H + 2 * P, W + 2 * P

    # Zero only the P-wide halo border strips (the interior is fully overwritten for
    # every group below).  Done every grid step -> safe with per-core scratch on v7x.
    if P > 0:
        xpad_ref[:, :P, :] = jnp.zeros((2, P, Wp), jnp.float32)
        xpad_ref[:, P + H:, :] = jnp.zeros((2, P, Wp), jnp.float32)
        xpad_ref[:, :, :P] = jnp.zeros((2, Hp, P), jnp.float32)
        xpad_ref[:, :, P + W:] = jnp.zeros((2, Hp, P), jnp.float32)

    def group_body(g, carry):
        g_glob = gb * Gt + g                                   # global group id
        x2 = x_ref[0, pl.ds(2 * g, 2)].astype(jnp.float32)     # (2, H, W)
        xpad_ref[:, P:P + H, P:P + W] = x2

        w_base = g_glob * (4 * KK)       # flat offset of this group's 2x2xKxK weights
        acc0 = None                      # accumulator for output channel 0 of the group
        acc1 = None                      # accumulator for output channel 1 of the group
        for i in range(2):               # input channel within the group
            for kh in range(K):
                for kw in range(K):
                    t = i * KK + kh * K + kw
                    w0 = w_ref[w_base + t]                           # scalar (SMEM)
                    w1 = w_ref[w_base + 2 * KK + t]                  # scalar (SMEM)
                    patch = xpad_ref[i, kh:kh + H, kw:kw + W]        # (H, W) read once
                    if acc0 is None:
                        acc0, acc1 = w0 * patch, w1 * patch
                    else:
                        acc0 = acc0 + w0 * patch
                        acc1 = acc1 + w1 * patch

        c = 2 * g_glob
        y0 = acc0 + b_ref[c] + x2[0]          # gamma already folded into w/b
        y1 = acc1 + b_ref[c + 1] + x2[1]
        out_ref[0, pl.ds(2 * g, 1)] = y0[None].astype(out_ref.dtype)
        out_ref[0, pl.ds(2 * g + 1, 1)] = y1[None].astype(out_ref.dtype)
        return carry

    lax.fori_loop(0, Gt, group_body, 0, unroll=2)


def _choose_group_tile(G, H, W, P, itemsize, budget_bytes=12 * 1024 * 1024, max_gt=32):
    """Largest divisor of G (<= max_gt) whose VMEM footprint fits the budget."""
    Hp, Wp = H + 2 * P, W + 2 * P
    best = 1
    for gt in range(1, min(G, max_gt) + 1):
        if G % gt:
            continue
        blk = 2 * gt * H * W * itemsize                       # one (1, 2*gt, H, W) block
        footprint = 2 * blk + 2 * blk + 2 * Hp * Wp * 4       # dbl-buffered in/out + halo
        if footprint <= budget_bytes:
            best = gt
    return best


def content_aware_fm(x_nchw, weight, bias, gamma, *, kernel_size):
    """x_nchw: (B, C, H, W); weight: (C, C//groups, k, k) torch layout; bias: (C,);
    gamma: scalar. groups = C // 2 (as in the module), i.e. 2 channels per group."""
    B, C, H, W = x_nchw.shape
    K = kernel_size
    assert K % 2 == 1, "even kernel_size would read OOB in VMEM (and the residual add only matches odd K)"
    P = set_padding_size(K)
    assert C % 2 == 0 and weight.shape == (C, 2, K, K), "expects 2 channels per group"
    G = C // 2
    Hp, Wp = H + 2 * P, W + 2 * P

    itemsize = jnp.dtype(x_nchw.dtype).itemsize
    Gt = _choose_group_tile(G, H, W, P, itemsize)

    # Fold gamma into the conv weights and bias:
    #   (conv_w(x) + b) * gamma + x == conv_{w*gamma}(x) + b*gamma + x
    gamma_f = jnp.asarray(gamma, jnp.float32).reshape(())
    w_flat = (weight.astype(jnp.float32) * gamma_f).reshape(-1)       # (C*2*K*K,)
    bias_f = (bias.astype(jnp.float32) * gamma_f).reshape(C)

    kernel = functools.partial(_cafm_kernel, H=H, W=W, K=K, P=P, Gt=Gt)

    flops = 2 * B * C * H * W * 2 * K * K
    bytes_accessed = 2 * B * C * H * W * itemsize + w_flat.size * 4 + C * 4

    # TODO(synk): add H row-band spatial tiling (halo rows via manual DMA) and a
    # lane-dense H*W-flattened roll+mask variant for very large images / widths far
    # from a multiple of 128.
    return pl.pallas_call(
        kernel,
        out_shape=jax.ShapeDtypeStruct((B, C, H, W), x_nchw.dtype),
        grid_spec=pltpu.PrefetchScalarGridSpec(
            num_scalar_prefetch=0,
            grid=(B, G // Gt),
            in_specs=[
                pl.BlockSpec(memory_space=pltpu.MemorySpace.SMEM),     # weights (gamma-folded)
                pl.BlockSpec(memory_space=pltpu.MemorySpace.SMEM),     # bias (gamma-folded)
                pl.BlockSpec((1, 2 * Gt, H, W), lambda b, gb: (b, gb, 0, 0)),
            ],
            out_specs=pl.BlockSpec((1, 2 * Gt, H, W), lambda b, gb: (b, gb, 0, 0)),
            scratch_shapes=[pltpu.VMEM((2, Hp, Wp), jnp.float32)],
        ),
        compiler_params=pltpu.CompilerParams(
            dimension_semantics=("parallel", "parallel"),
            vmem_limit_bytes=32 * 1024 * 1024,
        ),
        cost_estimate=pl.CostEstimate(
            flops=flops, transcendentals=0, bytes_accessed=bytes_accessed),
    )(w_flat, bias_f, x_nchw)


def _reference(x_nchw, weight, bias, gamma, *, kernel_size):
    P = set_padding_size(kernel_size)
    C = x_nchw.shape[1]
    groups = C // 2
    conv = lax.conv_general_dilated(
        x_nchw, weight, window_strides=(1, 1),
        padding=[(P, P), (P, P)],
        dimension_numbers=("NCHW", "OIHW", "NCHW"),
        feature_group_count=groups,
    ) + bias[None, :, None, None]
    return conv * gamma + x_nchw


if __name__ == "__main__":
    B, C, H, W = 2, 4, 16, 16
    K = 3
    groups = C // 2

    key = jax.random.PRNGKey(0)
    k1, k2, k3 = jax.random.split(key, 3)
    x = jax.random.normal(k1, (B, C, H, W), jnp.float32)
    weight = jax.random.normal(k2, (C, C // groups, K, K), jnp.float32) * 0.1
    bias = jax.random.normal(k3, (C,), jnp.float32) * 0.1
    # Module init sets gamma to zeros; use a deterministic nonzero value here so the
    # conv path is actually exercised (shapes/semantics unchanged).
    gamma = jnp.float32(0.5)

    out = content_aware_fm(x, weight, bias, gamma, kernel_size=K)
    out = jax.block_until_ready(out)

    ref = _reference(x, weight, bias, gamma, kernel_size=K)
    assert out.shape == (B, C, H, W)
    assert jnp.allclose(out, ref, atol=1e-4, rtol=1e-4), (
        float(jnp.max(jnp.abs(out - ref)))
    )
    print("KERNEL_OK")
</pallas_src>

<mosaic_0001>
module attributes {stable_mosaic.version = 11 : i64} {
  func.func @_cafm_kernel(%arg0: i32, %arg1: i32, %arg2: memref<72xf32, #tpu.memory_space<smem>>, %arg3: memref<4xf32, #tpu.memory_space<smem>>, %arg4: memref<1x4x16x16xf32, #tpu.memory_space<vmem>>, %arg5: memref<1x4x16x16xf32, #tpu.memory_space<vmem>>, %arg6: memref<2x18x18xf32, #tpu.memory_space<vmem>>) attributes {dimension_semantics = [#tpu.dimension_semantics<parallel>, #tpu.dimension_semantics<parallel>], iteration_bounds = array<i64: 2, 1>, scalar_prefetch = 0 : i64, scratch_operands = 1 : i64, tpu.core_type = #tpu.core_type<tc>, window_params = [{transform_indices = @transform_0, window_bounds = array<i64: 72>}, {transform_indices = @transform_1, window_bounds = array<i64: 4>}, {transform_indices = @transform_2, window_bounds = array<i64: 1, 4, 16, 16>}, {transform_indices = @transform_3, window_bounds = array<i64: 1, 4, 16, 16>}]} {
    %cst = arith.constant 0.000000e+00 : f32
    %0 = vector.broadcast %cst : f32 to vector<2x1x18xf32>
    %c0 = arith.constant 0 : index
    %c0_0 = arith.constant 0 : index
    %c0_1 = arith.constant 0 : index
    %1 = vector.load %arg6[%c0, %c0_0, %c0_1] : memref<2x18x18xf32, #tpu.memory_space<vmem>>, vector<2x1x18xf32>
    tpu.vector_store %arg6[%c0, %c0_0, %c0_1], %0 {strides = array<i32>} : memref<2x18x18xf32, #tpu.memory_space<vmem>>, vector<2x1x18xf32>,
    %cst_2 = arith.constant 0.000000e+00 : f32
    %2 = vector.broadcast %cst_2 : f32 to vector<2x1x18xf32>
    %c0_3 = arith.constant 0 : index
    %c17 = arith.constant 17 : index
    %c0_4 = arith.constant 0 : index
    %3 = vector.load %arg6[%c0_3, %c17, %c0_4] : memref<2x18x18xf32, #tpu.memory_space<vmem>>, vector<2x1x18xf32>
    tpu.vector_store %arg6[%c0_3, %c17, %c0_4], %2 {strides = array<i32>} : memref<2x18x18xf32, #tpu.memory_space<vmem>>, vector<2x1x18xf32>,
    %cst_5 = arith.constant 0.000000e+00 : f32
    %4 = vector.broadcast %cst_5 : f32 to vector<2x18x1xf32>
    %c0_6 = arith.constant 0 : index
    %c0_7 = arith.constant 0 : index
    %c0_8 = arith.constant 0 : index
    %5 = vector.load %arg6[%c0_6, %c0_7, %c0_8] : memref<2x18x18xf32, #tpu.memory_space<vmem>>, vector<2x18x1xf32>
    tpu.vector_store %arg6[%c0_6, %c0_7, %c0_8], %4 {strides = array<i32>} : memref<2x18x18xf32, #tpu.memory_space<vmem>>, vector<2x18x1xf32>,
    %cst_9 = arith.constant 0.000000e+00 : f32
    %6 = vector.broadcast %cst_9 : f32 to vector<2x18x1xf32>
    %c0_10 = arith.constant 0 : index
    %c0_11 = arith.constant 0 : index
    %c17_12 = arith.constant 17 : index
    %7 = vector.load %arg6[%c0_10, %c0_11, %c17_12] : memref<2x18x18xf32, #tpu.memory_space<vmem>>, vector<2x18x1xf32>
    tpu.vector_store %arg6[%c0_10, %c0_11, %c17_12], %6 {strides = array<i32>} : memref<2x18x18xf32, #tpu.memory_space<vmem>>, vector<2x18x1xf32>,
    %c0_i32 = arith.constant 0 : i32
    %c2_i32 = arith.constant 2 : i32
    %8 = arith.muli %arg1, %c2_i32 : i32
    %9 = arith.addi %8, %c0_i32 : i32
    %c2_i32_13 = arith.constant 2 : i32
    %10 = arith.muli %c2_i32_13, %c0_i32 : i32
    %c0_14 = arith.constant 0 : index
    %11 = arith.index_cast %10 : i32 to index
    %c0_15 = arith.constant 0 : index
    %c0_16 = arith.constant 0 : index
    %12 = vector.load %arg4[%c0_14, %11, %c0_15, %c0_16] : memref<1x4x16x16xf32, #tpu.memory_space<vmem>>, vector<1x2x16x16xf32>
    %13 = vector.shape_cast %12 : vector<1x2x16x16xf32> to vector<2x16x16xf32>
    %c0_17 = arith.constant 0 : index
    %c1 = arith.constant 1 : index
    %c1_18 = arith.constant 1 : index
    %14 = vector.load %arg6[%c0_17, %c1, %c1_18] : memref<2x18x18xf32, #tpu.memory_space<vmem>>, vector<2x16x16xf32>
    tpu.vector_store %arg6[%c0_17, %c1, %c1_18], %13 {strides = array<i32>} : memref<2x18x18xf32, #tpu.memory_space<vmem>>, vector<2x16x16xf32>,
    %c36_i32 = arith.constant 36 : i32
    %15 = arith.muli %9, %c36_i32 : i32
    %c0_i32_19 = arith.constant 0 : i32
    %16 = arith.addi %15, %c0_i32_19 : i32
    %17 = arith.index_cast %16 : i32 to index
    %18 = memref.load %arg2[%17] : memref<72xf32, #tpu.memory_space<smem>>
    %c18_i32 = arith.constant 18 : i32
    %19 = arith.addi %15, %c18_i32 : i32
    %c0_i32_20 = arith.constant 0 : i32
    %20 = arith.addi %19, %c0_i32_20 : i32
    %21 = arith.index_cast %20 : i32 to index
    %22 = memref.load %arg2[%21] : memref<72xf32, #tpu.memory_space<smem>>
    %c0_21 = arith.constant 0 : index
    %c0_22 = arith.constant 0 : index
    %c0_23 = arith.constant 0 : index
    %23 = vector.load %arg6[%c0_21, %c0_22, %c0_23] : memref<2x18x18xf32, #tpu.memory_space<vmem>>, vector<1x16x16xf32>
    %24 = vector.shape_cast %23 : vector<1x16x16xf32> to vector<16x16xf32>
    %25 = vector.broadcast %18 : f32 to vector<16x16xf32>
    %26 = arith.mulf %25, %24 : vector<16x16xf32>
    %27 = vector.broadcast %22 : f32 to vector<16x16xf32>
    %28 = arith.mulf %27, %24 : vector<16x16xf32>
    %c1_i32 = arith.constant 1 : i32
    %29 = arith.addi %15, %c1_i32 : i32
    %30 = arith.index_cast %29 : i32 to index
    %31 = memref.load %arg2[%30] : memref<72xf32, #tpu.memory_space<smem>>
    %c18_i32_24 = arith.constant 18 : i32
    %32 = arith.addi %15, %c18_i32_24 : i32
    %c1_i32_25 = arith.constant 1 : i32
    %33 = arith.addi %32, %c1_i32_25 : i32
    %34 = arith.index_cast %33 : i32 to index
    %35 = memref.load %arg2[%34] : memref<72xf32, #tpu.memory_space<smem>>
    %c0_26 = arith.constant 0 : index
    %c0_27 = arith.constant 0 : index
    %c1_28 = arith.constant 1 : index
    %36 = vector.load %arg6[%c0_26, %c0_27, %c1_28] : memref<2x18x18xf32, #tpu.memory_space<vmem>>, vector<1x16x16xf32>
    %37 = vector.shape_cast %36 : vector<1x16x16xf32> to vector<16x16xf32>
    %38 = vector.broadcast %31 : f32 to vector<16x16xf32>
    %39 = arith.mulf %38, %37 : vector<16x16xf32>
    %40 = arith.addf %26, %39 : vector<16x16xf32>
    %41 = vector.broadcast %35 : f32 to vector<16x16xf32>
    %42 = arith.mulf %41, %37 : vector<16x16xf32>
    %43 = arith.addf %28, %42 : vector<16x16xf32>
    %c2_i32_29 = arith.constant 2 : i32
    %44 = arith.addi %15, %c2_i32_29 : i32
    %45 = arith.index_cast %44 : i32 to index
    %46 = memref.load %arg2[%45] : memref<72xf32, #tpu.memory_space<smem>>
    %c18_i32_30 = arith.constant 18 : i32
    %47 = arith.addi %15, %c18_i32_30 : i32
    %c2_i32_31 = arith.constant 2 : i32
    %48 = arith.addi %47, %c2_i32_31 : i32
    %49 = arith.index_cast %48 : i32 to index
    %50 = memref.load %arg2[%49] : memref<72xf32, #tpu.memory_space<smem>>
    %c0_32 = arith.constant 0 : index
    %c0_33 = arith.constant 0 : index
    %c2 = arith.constant 2 : index
    %51 = vector.load %arg6[%c0_32, %c0_33, %c2] : memref<2x18x18xf32, #tpu.memory_space<vmem>>, vector<1x16x16xf32>
    %52 = vector.shape_cast %51 : vector<1x16x16xf32> to vector<16x16xf32>
    %53 = vector.broadcast %46 : f32 to vector<16x16xf32>
    %54 = arith.mulf %53, %52 : vector<16x16xf32>
    %55 = arith.addf %40, %54 : vector<16x16xf32>
    %56 = vector.broadcast %50 : f32 to vector<16x16xf32>
    %57 = arith.mulf %56, %52 : vector<16x16xf32>
    %58 = arith.addf %43, %57 : vector<16x16xf32>
    %c3_i32 = arith.constant 3 : i32
    %59 = arith.addi %15, %c3_i32 : i32
    %60 = arith.index_cast %59 : i32 to index
    %61 = memref.load %arg2[%60] : memref<72xf32, #tpu.memory_space<smem>>
    %c18_i32_34 = arith.constant 18 : i32
    %62 = arith.addi %15, %c18_i32_34 : i32
    %c3_i32_35 = arith.constant 3 : i32
    %63 = arith.addi %62, %c3_i32_35 : i32
    %64 = arith.index_cast %63 : i32 to index
    %65 = memref.load %arg2[%64] : memref<72xf32, #tpu.memory_space<smem>>
    %c0_36 = arith.constant 0 : index
    %c1_37 = arith.constant 1 : index
    %c0_38 = arith.constant 0 : index
    %66 = vector.load %arg6[%c0_36, %c1_37, %c0_38] : memref<2x18x18xf32, #tpu.memory_space<vmem>>, vector<1x16x16xf32>
    %67 = vector.shape_cast %66 : vector<1x16x16xf32> to vector<16x16xf32>
    %68 = vector.broadcast %61 : f32 to vector<16x16xf32>
    %69 = arith.mulf %68, %67 : vector<16x16xf32>
    %70 = arith.addf %55, %69 : vector<16x16xf32>
    %71 = vector.broadcast %65 : f32 to vector<16x16xf32>
    %72 = arith.mulf %71, %67 : vector<16x16xf32>
    %73 = arith.addf %58, %72 : vector<16x16xf32>
    %c4_i32 = arith.constant 4 : i32
    %74 = arith.addi %15, %c4_i32 : i32
    %75 = arith.index_cast %74 : i32 to index
    %76 = memref.load %arg2[%75] : memref<72xf32, #tpu.memory_space<smem>>
    %c18_i32_39 = arith.constant 18 : i32
    %77 = arith.addi %15, %c18_i32_39 : i32
    %c4_i32_40 = arith.constant 4 : i32
    %78 = arith.addi %77, %c4_i32_40 : i32
    %79 = arith.index_cast %78 : i32 to index
    %80 = memref.load %arg2[%79] : memref<72xf32, #tpu.memory_space<smem>>
    %c0_41 = arith.constant 0 : index
    %c1_42 = arith.constant 1 : index
    %c1_43 = arith.constant 1 : index
    %81 = vector.load %arg6[%c0_41, %c1_42, %c1_43] : memref<2x18x18xf32, #tpu.memory_space<vmem>>, vector<1x16x16xf32>
    %82 = vector.shape_cast %81 : vector<1x16x16xf32> to vector<16x16xf32>
    %83 = vector.broadcast %76 : f32 to vector<16x16xf32>
    %84 = arith.mulf %83, %82 : vector<16x16xf32>
    %85 = arith.addf %70, %84 : vector<16x16xf32>
    %86 = vector.broadcast %80 : f32 to vector<16x16xf32>
    %87 = arith.mulf %86, %82 : vector<16x16xf32>
    %88 = arith.addf %73, %87 : vector<16x16xf32>
    %c5_i32 = arith.constant 5 : i32
    %89 = arith.addi %15, %c5_i32 : i32
    %90 = arith.index_cast %89 : i32 to index
    %91 = memref.load %arg2[%90] : memref<72xf32, #tpu.memory_space<smem>>
    %c18_i32_44 = arith.constant 18 : i32
    %92 = arith.addi %15, %c18_i32_44 : i32
    %c5_i32_45 = arith.constant 5 : i32
    %93 = arith.addi %92, %c5_i32_45 : i32
    %94 = arith.index_cast %93 : i32 to index
    %95 = memref.load %arg2[%94] : memref<72xf32, #tpu.memory_space<smem>>
    %c0_46 = arith.constant 0 : index
    %c1_47 = arith.constant 1 : index
    %c2_48 = arith.constant 2 : index
    %96 = vector.load %arg6[%c0_46, %c1_47, %c2_48] : memref<2x18x18xf32, #tpu.memory_space<vmem>>, vector<1x16x16xf32>
    %97 = vector.shape_cast %96 : vector<1x16x16xf32> to vector<16x16xf32>
    %98 = vector.broadcast %91 : f32 to vector<16x16xf32>
    %99 = arith.mulf %98, %97 : vector<16x16xf32>
    %100 = arith.addf %85, %99 : vector<16x16xf32>
    %101 = vector.broadcast %95 : f32 to vector<16x16xf32>
    %102 = arith.mulf %101, %97 : vector<16x16xf32>
    %103 = arith.addf %88, %102 : vector<16x16xf32>
    %c6_i32 = arith.constant 6 : i32
    %104 = arith.addi %15, %c6_i32 : i32
    %105 = arith.index_cast %104 : i32 to index
    %106 = memref.load %arg2[%105] : memref<72xf32, #tpu.memory_space<smem>>
    %c18_i32_49 = arith.constant 18 : i32
    %107 = arith.addi %15, %c18_i32_49 : i32
    %c6_i32_50 = arith.constant 6 : i32
    %108 = arith.addi %107, %c6_i32_50 : i32
    %109 = arith.index_cast %108 : i32 to index
    %110 = memref.load %arg2[%109] : memref<72xf32, #tpu.memory_space<smem>>
    %c0_51 = arith.constant 0 : index
    %c2_52 = arith.constant 2 : index
    %c0_53 = arith.constant 0 : index
    %111 = vector.load %arg6[%c0_51, %c2_52, %c0_53] : memref<2x18x18xf32, #tpu.memory_space<vmem>>, vector<1x16x16xf32>
    %112 = vector.shape_cast %111 : vector<1x16x16xf32> to vector<16x16xf32>
    %113 = vector.broadcast %106 : f32 to vector<16x16xf32>
    %114 = arith.mulf %113, %112 : vector<16x16xf32>
    %115 = arith.addf %100, %114 : vector<16x16xf32>
    %116 = vector.broadcast %110 : f32 to vector<16x16xf32>
    %117 = arith.mulf %116, %112 : vector<16x16xf32>
    %118 = arith.addf %103, %117 : vector<16x16xf32>
    %c7_i32 = arith.constant 7 : i32
    %119 = arith.addi %15, %c7_i32 : i32
    %120 = arith.index_cast %119 : i32 to index
    %121 = memref.load %arg2[%120] : memref<72xf32, #tpu.memory_space<smem>>
    %c18_i32_54 = arith.constant 18 : i32
    %122 = arith.addi %15, %c18_i32_54 : i32
    %c7_i32_55 = arith.constant 7 : i32
    %123 = arith.addi %122, %c7_i32_55 : i32
    %124 = arith.index_cast %123 : i32 to index
    %125 = memref.load %arg2[%124] : memref<72xf32, #tpu.memory_space<smem>>
    %c0_56 = arith.constant 0 : index
    %c2_57 = arith.constant 2 : index
    %c1_58 = arith.constant 1 : index
    %126 = vector.load %arg6[%c0_56, %c2_57, %c1_58] : memref<2x18x18xf32, #tpu.memory_space<vmem>>, vector<1x16x16xf32>
    %127 = vector.shape_cast %126 : vector<1x16x16xf32> to vector<16x16xf32>
    %128 = vector.broadcast %121 : f32 to vector<16x16xf32>
    %129 = arith.mulf %128, %127 : vector<16x16xf32>
    %130 = arith.addf %115, %129 : vector<16x16xf32>
    %131 = vector.broadcast %125 : f32 to vector<16x16xf32>
    %132 = arith.mulf %131, %127 : vector<16x16xf32>
    %133 = arith.addf %118, %132 : vector<16x16xf32>
    %c8_i32 = arith.constant 8 : i32
    %134 = arith.addi %15, %c8_i32 : i32
    %135 = arith.index_cast %134 : i32 to index
    %136 = memref.load %arg2[%135] : memref<72xf32, #tpu.memory_space<smem>>
    %c18_i32_59 = arith.constant 18 : i32
    %137 = arith.addi %15, %c18_i32_59 : i32
    %c8_i32_60 = arith.constant 8 : i32
    %138 = arith.addi %137, %c8_i32_60 : i32
    %139 = arith.index_cast %138 : i32 to index
    %140 = memref.load %arg2[%139] : memref<72xf32, #tpu.memory_space<smem>>
    %c0_61 = arith.constant 0 : index
    %c2_62 = arith.constant 2 : index
    %c2_63 = arith.constant 2 : index
    %141 = vector.load %arg6[%c0_61, %c2_62, %c2_63] : memref<2x18x18xf32, #tpu.memory_space<vmem>>, vector<1x16x16xf32>
    %142 = vector.shape_cast %141 : vector<1x16x16xf32> to vector<16x16xf32>
    %143 = vector.broadcast %136 : f32 to vector<16x16xf32>
    %144 = arith.mulf %143, %142 : vector<16x16xf32>
    %145 = arith.addf %130, %144 : vector<16x16xf32>
    %146 = vector.broadcast %140 : f32 to vector<16x16xf32>
    %147 = arith.mulf %146, %142 : vector<16x16xf32>
    %148 = arith.addf %133, %147 : vector<16x16xf32>
    %c9_i32 = arith.constant 9 : i32
    %149 = arith.addi %15, %c9_i32 : i32
    %150 = arith.index_cast %149 : i32 to index
    %151 = memref.load %arg2[%150] : memref<72xf32, #tpu.memory_space<smem>>
    %c18_i32_64 = arith.constant 18 : i32
    %152 = arith.addi %15, %c18_i32_64 : i32
    %c9_i32_65 = arith.constant 9 : i32
    %153 = arith.addi %152, %c9_i32_65 : i32
    %154 = arith.index_cast %153 : i32 to index
    %155 = memref.load %arg2[%154] : memref<72xf32, #tpu.memory_space<smem>>
    %c1_66 = arith.constant 1 : index
    %c0_67 = arith.constant 0 : index
    %c0_68 = arith.constant 0 : index
    %156 = vector.load %arg6[%c1_66, %c0_67, %c0_68] : memref<2x18x18xf32, #tpu.memory_space<vmem>>, vector<1x16x16xf32>
    %157 = vector.shape_cast %156 : vector<1x16x16xf32> to vector<16x16xf32>
    %158 = vector.broadcast %151 : f32 to vector<16x16xf32>
    %159 = arith.mulf %158, %157 : vector<16x16xf32>
    %160 = arith.addf %145, %159 : vector<16x16xf32>
    %161 = vector.broadcast %155 : f32 to vector<16x16xf32>
    %162 = arith.mulf %161, %157 : vector<16x16xf32>
    %163 = arith.addf %148, %162 : vector<16x16xf32>
    %c10_i32 = arith.constant 10 : i32
    %164 = arith.addi %15, %c10_i32 : i32
    %165 = arith.index_cast %164 : i32 to index
    %166 = memref.load %arg2[%165] : memref<72xf32, #tpu.memory_space<smem>>
    %c18_i32_69 = arith.constant 18 : i32
    %167 = arith.addi %15, %c18_i32_69 : i32
    %c10_i32_70 = arith.constant 10 : i32
    %168 = arith.addi %167, %c10_i32_70 : i32
    %169 = arith.index_cast %168 : i32 to index
    %170 = memref.load %arg2[%169] : memref<72xf32, #tpu.memory_space<smem>>
    %c1_71 = arith.constant 1 : index
    %c0_72 = arith.constant 0 : index
    %c1_73 = arith.constant 1 : index
    %171 = vector.load %arg6[%c1_71, %c0_72, %c1_73] : memref<2x18x18xf32, #tpu.memory_space<vmem>>, vector<1x16x16xf32>
    %172 = vector.shape_cast %171 : vector<1x16x16xf32> to vector<16x16xf32>
    %173 = vector.broadcast %166 : f32 to vector<16x16xf32>
    %174 = arith.mulf %173, %172 : vector<16x16xf32>
    %175 = arith.addf %160, %174 : vector<16x16xf32>
    %176 = vector.broadcast %170 : f32 to vector<16x16xf32>
    %177 = arith.mulf %176, %172 : vector<16x16xf32>
    %178 = arith.addf %163, %177 : vector<16x16xf32>
    %c11_i32 = arith.constant 11 : i32
    %179 = arith.addi %15, %c11_i32 : i32
    %180 = arith.index_cast %179 : i32 to index
    %181 = memref.load %arg2[%180] : memref<72xf32, #tpu.memory_space<smem>>
    %c18_i32_74 = arith.constant 18 : i32
    %182 = arith.addi %15, %c18_i32_74 : i32
    %c11_i32_75 = arith.constant 11 : i32
    %183 = arith.addi %182, %c11_i32_75 : i32
    %184 = arith.index_cast %183 : i32 to index
    %185 = memref.load %arg2[%184] : memref<72xf32, #tpu.memory_space<smem>>
    %c1_76 = arith.constant 1 : index
    %c0_77 = arith.constant 0 : index
    %c2_78 = arith.constant 2 : index
    %186 = vector.load %arg6[%c1_76, %c0_77, %c2_78] : memref<2x18x18xf32, #tpu.memory_space<vmem>>, vector<1x16x16xf32>
    %187 = vector.shape_cast %186 : vector<1x16x16xf32> to vector<16x16xf32>
    %188 = vector.broadcast %181 : f32 to vector<16x16xf32>
    %189 = arith.mulf %188, %187 : vector<16x16xf32>
    %190 = arith.addf %175, %189 : vector<16x16xf32>
    %191 = vector.broadcast %185 : f32 to vector<16x16xf32>
    %192 = arith.mulf %191, %187 : vector<16x16xf32>
    %193 = arith.addf %178, %192 : vector<16x16xf32>
    %c12_i32 = arith.constant 12 : i32
    %194 = arith.addi %15, %c12_i32 : i32
    %195 = arith.index_cast %194 : i32 to index
    %196 = memref.load %arg2[%195] : memref<72xf32, #tpu.memory_space<smem>>
    %c18_i32_79 = arith.constant 18 : i32
    %197 = arith.addi %15, %c18_i32_79 : i32
    %c12_i32_80 = arith.constant 12 : i32
    %198 = arith.addi %197, %c12_i32_80 : i32
    %199 = arith.index_cast %198 : i32 to index
    %200 = memref.load %arg2[%199] : memref<72xf32, #tpu.memory_space<smem>>
    %c1_81 = arith.constant 1 : index
    %c1_82 = arith.constant 1 : index
    %c0_83 = arith.constant 0 : index
    %201 = vector.load %arg6[%c1_81, %c1_82, %c0_83] : memref<2x18x18xf32, #tpu.memory_space<vmem>>, vector<1x16x16xf32>
    %202 = vector.shape_cast %201 : vector<1x16x16xf32> to vector<16x16xf32>
    %203 = vector.broadcast %196 : f32 to vector<16x16xf32>
    %204 = arith.mulf %203, %202 : vector<16x16xf32>
    %205 = arith.addf %190, %204 : vector<16x16xf32>
    %206 = vector.broadcast %200 : f32 to vector<16x16xf32>
    %207 = arith.mulf %206, %202 : vector<16x16xf32>
    %208 = arith.addf %193, %207 : vector<16x16xf32>
    %c13_i32 = arith.constant 13 : i32
    %209 = arith.addi %15, %c13_i32 : i32
    %210 = arith.index_cast %209 : i32 to index
    %211 = memref.load %arg2[%210] : memref<72xf32, #tpu.memory_space<smem>>
    %c18_i32_84 = arith.constant 18 : i32
    %212 = arith.addi %15, %c18_i32_84 : i32
    %c13_i32_85 = arith.constant 13 : i32
    %213 = arith.addi %212, %c13_i32_85 : i32
    %214 = arith.index_cast %213 : i32 to index
    %215 = memref.load %arg2[%214] : memref<72xf32, #tpu.memory_space<smem>>
    %c1_86 = arith.constant 1 : index
    %c1_87 = arith.constant 1 : index
    %c1_88 = arith.constant 1 : index
    %216 = vector.load %arg6[%c1_86, %c1_87, %c1_88] : memref<2x18x18xf32, #tpu.memory_space<vmem>>, vector<1x16x16xf32>
    %217 = vector.shape_cast %216 : vector<1x16x16xf32> to vector<16x16xf32>
    %218 = vector.broadcast %211 : f32 to vector<16x16xf32>
    %219 = arith.mulf %218, %217 : vector<16x16xf32>
    %220 = arith.addf %205, %219 : vector<16x16xf32>
    %221 = vector.broadcast %215 : f32 to vector<16x16xf32>
    %222 = arith.mulf %221, %217 : vector<16x16xf32>
    %223 = arith.addf %208, %222 : vector<16x16xf32>
    %c14_i32 = arith.constant 14 : i32
    %224 = arith.addi %15, %c14_i32 : i32
    %225 = arith.index_cast %224 : i32 to index
    %226 = memref.load %arg2[%225] : memref<72xf32, #tpu.memory_space<smem>>
    %c18_i32_89 = arith.constant 18 : i32
    %227 = arith.addi %15, %c18_i32_89 : i32
    %c14_i32_90 = arith.constant 14 : i32
    %228 = arith.addi %227, %c14_i32_90 : i32
    %229 = arith.index_cast %228 : i32 to index
    %230 = memref.load %arg2[%229] : memref<72xf32, #tpu.memory_space<smem>>
    %c1_91 = arith.constant 1 : index
    %c1_92 = arith.constant 1 : index
    %c2_93 = arith.constant 2 : index
    %231 = vector.load %arg6[%c1_91, %c1_92, %c2_93] : memref<2x18x18xf32, #tpu.memory_space<vmem>>, vector<1x16x16xf32>
    %232 = vector.shape_cast %231 : vector<1x16x16xf32> to vector<16x16xf32>
    %233 = vector.broadcast %226 : f32 to vector<16x16xf32>
    %234 = arith.mulf %233, %232 : vector<16x16xf32>
    %235 = arith.addf %220, %234 : vector<16x16xf32>
    %236 = vector.broadcast %230 : f32 to vector<16x16xf32>
    %237 = arith.mulf %236, %232 : vector<16x16xf32>
    %238 = arith.addf %223, %237 : vector<16x16xf32>
    %c15_i32 = arith.constant 15 : i32
    %239 = arith.addi %15, %c15_i32 : i32
    %240 = arith.index_cast %239 : i32 to index
    %241 = memref.load %arg2[%240] : memref<72xf32, #tpu.memory_space<smem>>
    %c18_i32_94 = arith.constant 18 : i32
    %242 = arith.addi %15, %c18_i32_94 : i32
    %c15_i32_95 = arith.constant 15 : i32
    %243 = arith.addi %242, %c15_i32_95 : i32
    %244 = arith.index_cast %243 : i32 to index
    %245 = memref.load %arg2[%244] : memref<72xf32, #tpu.memory_space<smem>>
    %c1_96 = arith.constant 1 : index
    %c2_97 = arith.constant 2 : index
    %c0_98 = arith.constant 0 : index
    %246 = vector.load %arg6[%c1_96, %c2_97, %c0_98] : memref<2x18x18xf32, #tpu.memory_space<vmem>>, vector<1x16x16xf32>
    %247 = vector.shape_cast %246 : vector<1x16x16xf32> to vector<16x16xf32>
    %248 = vector.broadcast %241 : f32 to vector<16x16xf32>
    %249 = arith.mulf %248, %247 : vector<16x16xf32>
    %250 = arith.addf %235, %249 : vector<16x16xf32>
    %251 = vector.broadcast %245 : f32 to vector<16x16xf32>
    %252 = arith.mulf %251, %247 : vector<16x16xf32>
    %253 = arith.addf %238, %252 : vector<16x16xf32>
    %c16_i32 = arith.constant 16 : i32
    %254 = arith.addi %15, %c16_i32 : i32
    %255 = arith.index_cast %254 : i32 to index
    %256 = memref.load %arg2[%255] : memref<72xf32, #tpu.memory_space<smem>>
    %c18_i32_99 = arith.constant 18 : i32
    %257 = arith.addi %15, %c18_i32_99 : i32
    %c16_i32_100 = arith.constant 16 : i32
    %258 = arith.addi %257, %c16_i32_100 : i32
    %259 = arith.index_cast %258 : i32 to index
    %260 = memref.load %arg2[%259] : memref<72xf32, #tpu.memory_space<smem>>
    %c1_101 = arith.constant 1 : index
    %c2_102 = arith.constant 2 : index
    %c1_103 = arith.constant 1 : index
    %261 = vector.load %arg6[%c1_101, %c2_102, %c1_103] : memref<2x18x18xf32, #tpu.memory_space<vmem>>, vector<1x16x16xf32>
    %262 = vector.shape_cast %261 : vector<1x16x16xf32> to vector<16x16xf32>
    %263 = vector.broadcast %256 : f32 to vector<16x16xf32>
    %264 = arith.mulf %263, %262 : vector<16x16xf32>
    %265 = arith.addf %250, %264 : vector<16x16xf32>
    %266 = vector.broadcast %260 : f32 to vector<16x16xf32>
    %267 = arith.mulf %266, %262 : vector<16x16xf32>
    %268 = arith.addf %253, %267 : vector<16x16xf32>
    %c17_i32 = arith.constant 17 : i32
    %269 = arith.addi %15, %c17_i32 : i32
    %270 = arith.index_cast %269 : i32 to index
    %271 = memref.load %arg2[%270] : memref<72xf32, #tpu.memory_space<smem>>
    %c18_i32_104 = arith.constant 18 : i32
    %272 = arith.addi %15, %c18_i32_104 : i32
    %c17_i32_105 = arith.constant 17 : i32
    %273 = arith.addi %272, %c17_i32_105 : i32
    %274 = arith.index_cast %273 : i32 to index
    %275 = memref.load %arg2[%274] : memref<72xf32, #tpu.memory_space<smem>>
    %c1_106 = arith.constant 1 : index
    %c2_107 = arith.constant 2 : index
    %c2_108 = arith.constant 2 : index
    %276 = vector.load %arg6[%c1_106, %c2_107, %c2_108] : memref<2x18x18xf32, #tpu.memory_space<vmem>>, vector<1x16x16xf32>
    %277 = vector.shape_cast %276 : vector<1x16x16xf32> to vector<16x16xf32>
    %278 = vector.broadcast %271 : f32 to vector<16x16xf32>
    %279 = arith.mulf %278, %277 : vector<16x16xf32>
    %280 = arith.addf %265, %279 : vector<16x16xf32>
    %281 = vector.broadcast %275 : f32 to vector<16x16xf32>
    %282 = arith.mulf %281, %277 : vector<16x16xf32>
    %283 = arith.addf %268, %282 : vector<16x16xf32>
    %c2_i32_109 = arith.constant 2 : i32
    %284 = arith.muli %c2_i32_109, %9 : i32
    %285 = arith.index_cast %284 : i32 to index
    %286 = memref.load %arg3[%285] : memref<4xf32, #tpu.memory_space<smem>>
    %287 = vector.broadcast %286 : f32 to vector<16x16xf32>
    %288 = arith.addf %280, %287 : vector<16x16xf32>
    %289 = vector.extract_strided_slice %13 {offsets = [0, 0, 0], sizes = [1, 16, 16], strides = [1, 1, 1]} : vector<2x16x16xf32> to vector<1x16x16xf32>
    %290 = vector.shape_cast %289 : vector<1x16x16xf32> to vector<16x16xf32>
    %291 = arith.addf %288, %290 : vector<16x16xf32>
    %c1_i32_110 = arith.constant 1 : i32
    %292 = arith.addi %284, %c1_i32_110 : i32
    %293 = arith.index_cast %292 : i32 to index
    %294 = memref.load %arg3[%293] : memref<4xf32, #tpu.memory_space<smem>>
    %295 = vector.broadcast %294 : f32 to vector<16x16xf32>
    %296 = arith.addf %283, %295 : vector<16x16xf32>
    %297 = vector.extract_strided_slice %13 {offsets = [1, 0, 0], sizes = [1, 16, 16], strides = [1, 1, 1]} : vector<2x16x16xf32> to vector<1x16x16xf32>
    %298 = vector.shape_cast %297 : vector<1x16x16xf32> to vector<16x16xf32>
    %299 = arith.addf %296, %298 : vector<16x16xf32>
    %300 = vector.shape_cast %291 : vector<16x16xf32> to vector<1x16x16xf32>
    %c2_i32_111 = arith.constant 2 : i32
    %301 = arith.muli %c2_i32_111, %c0_i32 : i32
    %c0_112 = arith.constant 0 : index
    %302 = arith.index_cast %301 : i32 to index
    %c0_113 = arith.constant 0 : index
    %c0_114 = arith.constant 0 : index
    %303 = vector.load %arg5[%c0_112, %302, %c0_113, %c0_114] : memref<1x4x16x16xf32, #tpu.memory_space<vmem>>, vector<1x1x16x16xf32>
    %304 = vector.shape_cast %303 : vector<1x1x16x16xf32> to vector<1x16x16xf32>
    %305 = vector.shape_cast %300 : vector<1x16x16xf32> to vector<1x1x16x16xf32>
    tpu.vector_store %arg5[%c0_112, %302, %c0_113, %c0_114], %305 {strides = array<i32>} : memref<1x4x16x16xf32, #tpu.memory_space<vmem>>, vector<1x1x16x16xf32>,
    %306 = vector.shape_cast %299 : vector<16x16xf32> to vector<1x16x16xf32>
    %c2_i32_115 = arith.constant 2 : i32
    %307 = arith.muli %c2_i32_115, %c0_i32 : i32
    %c1_i32_116 = arith.constant 1 : i32
    %308 = arith.addi %307, %c1_i32_116 : i32
    %c0_117 = arith.constant 0 : index
    %309 = arith.index_cast %308 : i32 to index
    %c0_118 = arith.constant 0 : index
    %c0_119 = arith.constant 0 : index
    %310 = vector.load %arg5[%c0_117, %309, %c0_118, %c0_119] : memref<1x4x16x16xf32, #tpu.memory_space<vmem>>, vector<1x1x16x16xf32>
    %311 = vector.shape_cast %310 : vector<1x1x16x16xf32> to vector<1x16x16xf32>
    %312 = vector.shape_cast %306 : vector<1x16x16xf32> to vector<1x1x16x16xf32>
    tpu.vector_store %arg5[%c0_117, %309, %c0_118, %c0_119], %312 {strides = array<i32>} : memref<1x4x16x16xf32, #tpu.memory_space<vmem>>, vector<1x1x16x16xf32>,
    %c1_i32_120 = arith.constant 1 : i32
    %c2_i32_121 = arith.constant 2 : i32
    %313 = arith.muli %arg1, %c2_i32_121 : i32
    %314 = arith.addi %313, %c1_i32_120 : i32
    %c2_i32_122 = arith.constant 2 : i32
    %315 = arith.muli %c2_i32_122, %c1_i32_120 : i32
    %c0_123 = arith.constant 0 : index
    %316 = arith.index_cast %315 : i32 to index
    %c0_124 = arith.constant 0 : index
    %c0_125 = arith.constant 0 : index
    %317 = vector.load %arg4[%c0_123, %316, %c0_124, %c0_125] : memref<1x4x16x16xf32, #tpu.memory_space<vmem>>, vector<1x2x16x16xf32>
    %318 = vector.shape_cast %317 : vector<1x2x16x16xf32> to vector<2x16x16xf32>
    %c0_126 = arith.constant 0 : index
    %c1_127 = arith.constant 1 : index
    %c1_128 = arith.constant 1 : index
    %319 = vector.load %arg6[%c0_126, %c1_127, %c1_128] : memref<2x18x18xf32, #tpu.memory_space<vmem>>, vector<2x16x16xf32>
    tpu.vector_store %arg6[%c0_126, %c1_127, %c1_128], %318 {strides = array<i32>} : memref<2x18x18xf32, #tpu.memory_space<vmem>>, vector<2x16x16xf32>,
    %c36_i32_129 = arith.constant 36 : i32
    %320 = arith.muli %314, %c36_i32_129 : i32
    %c0_i32_130 = arith.constant 0 : i32
    %321 = arith.addi %320, %c0_i32_130 : i32
    %322 = arith.index_cast %321 : i32 to index
    %323 = memref.load %arg2[%322] : memref<72xf32, #tpu.memory_space<smem>>
    %c18_i32_131 = arith.constant 18 : i32
    %324 = arith.addi %320, %c18_i32_131 : i32
    %c0_i32_132 = arith.constant 0 : i32
    %325 = arith.addi %324, %c0_i32_132 : i32
    %326 = arith.index_cast %325 : i32 to index
    %327 = memref.load %arg2[%326] : memref<72xf32, #tpu.memory_space<smem>>
    %c0_133 = arith.constant 0 : index
    %c0_134 = arith.constant 0 : index
    %c0_135 = arith.constant 0 : index
    %328 = vector.load %arg6[%c0_133, %c0_134, %c0_135] : memref<2x18x18xf32, #tpu.memory_space<vmem>>, vector<1x16x16xf32>
    %329 = vector.shape_cast %328 : vector<1x16x16xf32> to vector<16x16xf32>
    %330 = vector.broadcast %323 : f32 to vector<16x16xf32>
    %331 = arith.mulf %330, %329 : vector<16x16xf32>
    %332 = vector.broadcast %327 : f32 to vector<16x16xf32>
    %333 = arith.mulf %332, %329 : vector<16x16xf32>
    %c1_i32_136 = arith.constant 1 : i32
    %334 = arith.addi %320, %c1_i32_136 : i32
    %335 = arith.index_cast %334 : i32 to index
    %336 = memref.load %arg2[%335] : memref<72xf32, #tpu.memory_space<smem>>
    %c18_i32_137 = arith.constant 18 : i32
    %337 = arith.addi %320, %c18_i32_137 : i32
    %c1_i32_138 = arith.constant 1 : i32
    %338 = arith.addi %337, %c1_i32_138 : i32
    %339 = arith.index_cast %338 : i32 to index
    %340 = memref.load %arg2[%339] : memref<72xf32, #tpu.memory_space<smem>>
    %c0_139 = arith.constant 0 : index
    %c0_140 = arith.constant 0 : index
    %c1_141 = arith.constant 1 : index
    %341 = vector.load %arg6[%c0_139, %c0_140, %c1_141] : memref<2x18x18xf32, #tpu.memory_space<vmem>>, vector<1x16x16xf32>
    %342 = vector.shape_cast %341 : vector<1x16x16xf32> to vector<16x16xf32>
    %343 = vector.broadcast %336 : f32 to vector<16x16xf32>
    %344 = arith.mulf %343, %342 : vector<16x16xf32>
    %345 = arith.addf %331, %344 : vector<16x16xf32>
    %346 = vector.broadcast %340 : f32 to vector<16x16xf32>
    %347 = arith.mulf %346, %342 : vector<16x16xf32>
    %348 = arith.addf %333, %347 : vector<16x16xf32>
    %c2_i32_142 = arith.constant 2 : i32
    %349 = arith.addi %320, %c2_i32_142 : i32
    %350 = arith.index_cast %349 : i32 to index
    %351 = memref.load %arg2[%350] : memref<72xf32, #tpu.memory_space<smem>>
    %c18_i32_143 = arith.constant 18 : i32
    %352 = arith.addi %320, %c18_i32_143 : i32
    %c2_i32_144 = arith.constant 2 : i32
    %353 = arith.addi %352, %c2_i32_144 : i32
    %354 = arith.index_cast %353 : i32 to index
    %355 = memref.load %arg2[%354] : memref<72xf32, #tpu.memory_space<smem>>
    %c0_145 = arith.constant 0 : index
    %c0_146 = arith.constant 0 : index
    %c2_147 = arith.constant 2 : index
    %356 = vector.load %arg6[%c0_145, %c0_146, %c2_147] : memref<2x18x18xf32, #tpu.memory_space<vmem>>, vector<1x16x16xf32>
    %357 = vector.shape_cast %356 : vector<1x16x16xf32> to vector<16x16xf32>
    %358 = vector.broadcast %351 : f32 to vector<16x16xf32>
    %359 = arith.mulf %358, %357 : vector<16x16xf32>
    %360 = arith.addf %345, %359 : vector<16x16xf32>
    %361 = vector.broadcast %355 : f32 to vector<16x16xf32>
    %362 = arith.mulf %361, %357 : vector<16x16xf32>
    %363 = arith.addf %348, %362 : vector<16x16xf32>
    %c3_i32_148 = arith.constant 3 : i32
    %364 = arith.addi %320, %c3_i32_148 : i32
    %365 = arith.index_cast %364 : i32 to index
    %366 = memref.load %arg2[%365] : memref<72xf32, #tpu.memory_space<smem>>
    %c18_i32_149 = arith.constant 18 : i32
    %367 = arith.addi %320, %c18_i32_149 : i32
    %c3_i32_150 = arith.constant 3 : i32
    %368 = arith.addi %367, %c3_i32_150 : i32
    %369 = arith.index_cast %368 : i32 to index
    %370 = memref.load %arg2[%369] : memref<72xf32, #tpu.memory_space<smem>>
    %c0_151 = arith.constant 0 : index
    %c1_152 = arith.constant 1 : index
    %c0_153 = arith.constant 0 : index
    %371 = vector.load %arg6[%c0_151, %c1_152, %c0_153] : memref<2x18x18xf32, #tpu.memory_space<vmem>>, vector<1x16x16xf32>
    %372 = vector.shape_cast %371 : vector<1x16x16xf32> to vector<16x16xf32>
    %373 = vector.broadcast %366 : f32 to vector<16x16xf32>
    %374 = arith.mulf %373, %372 : vector<16x16xf32>
    %375 = arith.addf %360, %374 : vector<16x16xf32>
    %376 = vector.broadcast %370 : f32 to vector<16x16xf32>
    %377 = arith.mulf %376, %372 : vector<16x16xf32>
    %378 = arith.addf %363, %377 : vector<16x16xf32>
    %c4_i32_154 = arith.constant 4 : i32
    %379 = arith.addi %320, %c4_i32_154 : i32
    %380 = arith.index_cast %379 : i32 to index
    %381 = memref.load %arg2[%380] : memref<72xf32, #tpu.memory_space<smem>>
    %c18_i32_155 = arith.constant 18 : i32
    %382 = arith.addi %320, %c18_i32_155 : i32
    %c4_i32_156 = arith.constant 4 : i32
    %383 = arith.addi %382, %c4_i32_156 : i32
    %384 = arith.index_cast %383 : i32 to index
    %385 = memref.load %arg2[%384] : memref<72xf32, #tpu.memory_space<smem>>
    %c0_157 = arith.constant 0 : index
    %c1_158 = arith.constant 1 : index
    %c1_159 = arith.constant 1 : index
    %386 = vector.load %arg6[%c0_157, %c1_158, %c1_159] : memref<2x18x18xf32, #tpu.memory_space<vmem>>, vector<1x16x16xf32>
    %387 = vector.shape_cast %386 : vector<1x16x16xf32> to vector<16x16xf32>
    %388 = vector.broadcast %381 : f32 to vector<16x16xf32>
    %389 = arith.mulf %388, %387 : vector<16x16xf32>
    %390 = arith.addf %375, %389 : vector<16x16xf32>
    %391 = vector.broadcast %385 : f32 to vector<16x16xf32>
    %392 = arith.mulf %391, %387 : vector<16x16xf32>
    %393 = arith.addf %378, %392 : vector<16x16xf32>
    %c5_i32_160 = arith.constant 5 : i32
    %394 = arith.addi %320, %c5_i32_160 : i32
    %395 = arith.index_cast %394 : i32 to index
    %396 = memref.load %arg2[%395] : memref<72xf32, #tpu.memory_space<smem>>
    %c18_i32_161 = arith.constant 18 : i32
    %397 = arith.addi %320, %c18_i32_161 : i32
    %c5_i32_162 = arith.constant 5 : i32
    %398 = arith.addi %397, %c5_i32_162 : i32
    %399 = arith.index_cast %398 : i32 to index
    %400 = memref.load %arg2[%399] : memref<72xf32, #tpu.memory_space<smem>>
    %c0_163 = arith.constant 0 : index
    %c1_164 = arith.constant 1 : index
    %c2_165 = arith.constant 2 : index
    %401 = vector.load %arg6[%c0_163, %c1_164, %c2_165] : memref<2x18x18xf32, #tpu.memory_space<vmem>>, vector<1x16x16xf32>
    %402 = vector.shape_cast %401 : vector<1x16x16xf32> to vector<16x16xf32>
    %403 = vector.broadcast %396 : f32 to vector<16x16xf32>
    %404 = arith.mulf %403, %402 : vector<16x16xf32>
    %405 = arith.addf %390, %404 : vector<16x16xf32>
    %406 = vector.broadcast %400 : f32 to vector<16x16xf32>
    %407 = arith.mulf %406, %402 : vector<16x16xf32>
    %408 = arith.addf %393, %407 : vector<16x16xf32>
    %c6_i32_166 = arith.constant 6 : i32
    %409 = arith.addi %320, %c6_i32_166 : i32
    %410 = arith.index_cast %409 : i32 to index
    %411 = memref.load %arg2[%410] : memref<72xf32, #tpu.memory_space<smem>>
    %c18_i32_167 = arith.constant 18 : i32
    %412 = arith.addi %320, %c18_i32_167 : i32
    %c6_i32_168 = arith.constant 6 : i32
    %413 = arith.addi %412, %c6_i32_168 : i32
    %414 = arith.index_cast %413 : i32 to index
    %415 = memref.load %arg2[%414] : memref<72xf32, #tpu.memory_space<smem>>
    %c0_169 = arith.constant 0 : index
    %c2_170 = arith.constant 2 : index
    %c0_171 = arith.constant 0 : index
    %416 = vector.load %arg6[%c0_169, %c2_170, %c0_171] : memref<2x18x18xf32, #tpu.memory_space<vmem>>, vector<1x16x16xf32>
    %417 = vector.shape_cast %416 : vector<1x16x16xf32> to vector<16x16xf32>
    %418 = vector.broadcast %411 : f32 to vector<16x16xf32>
    %419 = arith.mulf %418, %417 : vector<16x16xf32>
    %420 = arith.addf %405, %419 : vector<16x16xf32>
    %421 = vector.broadcast %415 : f32 to vector<16x16xf32>
    %422 = arith.mulf %421, %417 : vector<16x16xf32>
    %423 = arith.addf %408, %422 : vector<16x16xf32>
    %c7_i32_172 = arith.constant 7 : i32
    %424 = arith.addi %320, %c7_i32_172 : i32
    %425 = arith.index_cast %424 : i32 to index
    %426 = memref.load %arg2[%425] : memref<72xf32, #tpu.memory_space<smem>>
    %c18_i32_173 = arith.constant 18 : i32
    %427 = arith.addi %320, %c18_i32_173 : i32
    %c7_i32_174 = arith.constant 7 : i32
    %428 = arith.addi %427, %c7_i32_174 : i32
    %429 = arith.index_cast %428 : i32 to index
    %430 = memref.load %arg2[%429] : memref<72xf32, #tpu.memory_space<smem>>
    %c0_175 = arith.constant 0 : index
    %c2_176 = arith.constant 2 : index
    %c1_177 = arith.constant 1 : index
    %431 = vector.load %arg6[%c0_175, %c2_176, %c1_177] : memref<2x18x18xf32, #tpu.memory_space<vmem>>, vector<1x16x16xf32>
    %432 = vector.shape_cast %431 : vector<1x16x16xf32> to vector<16x16xf32>
    %433 = vector.broadcast %426 : f32 to vector<16x16xf32>
    %434 = arith.mulf %433, %432 : vector<16x16xf32>
    %435 = arith.addf %420, %434 : vector<16x16xf32>
    %436 = vector.broadcast %430 : f32 to vector<16x16xf32>
    %437 = arith.mulf %436, %432 : vector<16x16xf32>
    %438 = arith.addf %423, %437 : vector<16x16xf32>
    %c8_i32_178 = arith.constant 8 : i32
    %439 = arith.addi %320, %c8_i32_178 : i32
    %440 = arith.index_cast %439 : i32 to index
    %441 = memref.load %arg2[%440] : memref<72xf32, #tpu.memory_space<smem>>
    %c18_i32_179 = arith.constant 18 : i32
    %442 = arith.addi %320, %c18_i32_179 : i32
    %c8_i32_180 = arith.constant 8 : i32
    %443 = arith.addi %442, %c8_i32_180 : i32
    %444 = arith.index_cast %443 : i32 to index
    %445 = memref.load %arg2[%444] : memref<72xf32, #tpu.memory_space<smem>>
    %c0_181 = arith.constant 0 : index
    %c2_182 = arith.constant 2 : index
    %c2_183 = arith.constant 2 : index
    %446 = vector.load %arg6[%c0_181, %c2_182, %c2_183] : memref<2x18x18xf32, #tpu.memory_space<vmem>>, vector<1x16x16xf32>
    %447 = vector.shape_cast %446 : vector<1x16x16xf32> to vector<16x16xf32>
    %448 = vector.broadcast %441 : f32 to vector<16x16xf32>
    %449 = arith.mulf %448, %447 : vector<16x16xf32>
    %450 = arith.addf %435, %449 : vector<16x16xf32>
    %451 = vector.broadcast %445 : f32 to vector<16x16xf32>
    %452 = arith.mulf %451, %447 : vector<16x16xf32>
    %453 = arith.addf %438, %452 : vector<16x16xf32>
    %c9_i32_184 = arith.constant 9 : i32
    %454 = arith.addi %320, %c9_i32_184 : i32
    %455 = arith.index_cast %454 : i32 to index
    %456 = memref.load %arg2[%455] : memref<72xf32, #tpu.memory_space<smem>>
    %c18_i32_185 = arith.constant 18 : i32
    %457 = arith.addi %320, %c18_i32_185 : i32
    %c9_i32_186 = arith.constant 9 : i32
    %458 = arith.addi %457, %c9_i32_186 : i32
    %459 = arith.index_cast %458 : i32 to index
    %460 = memref.load %arg2[%459] : memref<72xf32, #tpu.memory_space<smem>>
    %c1_187 = arith.constant 1 : index
    %c0_188 = arith.constant 0 : index
    %c0_189 = arith.constant 0 : index
    %461 = vector.load %arg6[%c1_187, %c0_188, %c0_189] : memref<2x18x18xf32, #tpu.memory_space<vmem>>, vector<1x16x16xf32>
    %462 = vector.shape_cast %461 : vector<1x16x16xf32> to vector<16x16xf32>
    %463 = vector.broadcast %456 : f32 to vector<16x16xf32>
    %464 = arith.mulf %463, %462 : vector<16x16xf32>
    %465 = arith.addf %450, %464 : vector<16x16xf32>
    %466 = vector.broadcast %460 : f32 to vector<16x16xf32>
    %467 = arith.mulf %466, %462 : vector<16x16xf32>
    %468 = arith.addf %453, %467 : vector<16x16xf32>
    %c10_i32_190 = arith.constant 10 : i32
    %469 = arith.addi %320, %c10_i32_190 : i32
    %470 = arith.index_cast %469 : i32 to index
    %471 = memref.load %arg2[%470] : memref<72xf32, #tpu.memory_space<smem>>
    %c18_i32_191 = arith.constant 18 : i32
    %472 = arith.addi %320, %c18_i32_191 : i32
    %c10_i32_192 = arith.constant 10 : i32
    %473 = arith.addi %472, %c10_i32_192 : i32
    %474 = arith.index_cast %473 : i32 to index
    %475 = memref.load %arg2[%474] : memref<72xf32, #tpu.memory_space<smem>>
    %c1_193 = arith.constant 1 : index
    %c0_194 = arith.constant 0 : index
    %c1_195 = arith.constant 1 : index
    %476 = vector.load %arg6[%c1_193, %c0_194, %c1_195] : memref<2x18x18xf32, #tpu.memory_space<vmem>>, vector<1x16x16xf32>
    %477 = vector.shape_cast %476 : vector<1x16x16xf32> to vector<16x16xf32>
    %478 = vector.broadcast %471 : f32 to vector<16x16xf32>
    %479 = arith.mulf %478, %477 : vector<16x16xf32>
    %480 = arith.addf %465, %479 : vector<16x16xf32>
    %481 = vector.broadcast %475 : f32 to vector<16x16xf32>
    %482 = arith.mulf %481, %477 : vector<16x16xf32>
    %483 = arith.addf %468, %482 : vector<16x16xf32>
    %c11_i32_196 = arith.constant 11 : i32
    %484 = arith.addi %320, %c11_i32_196 : i32
    %485 = arith.index_cast %484 : i32 to index
    %486 = memref.load %arg2[%485] : memref<72xf32, #tpu.memory_space<smem>>
    %c18_i32_197 = arith.constant 18 : i32
    %487 = arith.addi %320, %c18_i32_197 : i32
    %c11_i32_198 = arith.constant 11 : i32
    %488 = arith.addi %487, %c11_i32_198 : i32
    %489 = arith.index_cast %488 : i32 to index
    %490 = memref.load %arg2[%489] : memref<72xf32, #tpu.memory_space<smem>>
    %c1_199 = arith.constant 1 : index
    %c0_200 = arith.constant 0 : index
    %c2_201 = arith.constant 2 : index
    %491 = vector.load %arg6[%c1_199, %c0_200, %c2_201] : memref<2x18x18xf32, #tpu.memory_space<vmem>>, vector<1x16x16xf32>
    %492 = vector.shape_cast %491 : vector<1x16x16xf32> to vector<16x16xf32>
    %493 = vector.broadcast %486 : f32 to vector<16x16xf32>
    %494 = arith.mulf %493, %492 : vector<16x16xf32>
    %495 = arith.addf %480, %494 : vector<16x16xf32>
    %496 = vector.broadcast %490 : f32 to vector<16x16xf32>
    %497 = arith.mulf %496, %492 : vector<16x16xf32>
    %498 = arith.addf %483, %497 : vector<16x16xf32>
    %c12_i32_202 = arith.constant 12 : i32
    %499 = arith.addi %320, %c12_i32_202 : i32
    %500 = arith.index_cast %499 : i32 to index
    %501 = memref.load %arg2[%500] : memref<72xf32, #tpu.memory_space<smem>>
    %c18_i32_203 = arith.constant 18 : i32
    %502 = arith.addi %320, %c18_i32_203 : i32
    %c12_i32_204 = arith.constant 12 : i32
    %503 = arith.addi %502, %c12_i32_204 : i32
    %504 = arith.index_cast %503 : i32 to index
    %505 = memref.load %arg2[%504] : memref<72xf32, #tpu.memory_space<smem>>
    %c1_205 = arith.constant 1 : index
    %c1_206 = arith.constant 1 : index
    %c0_207 = arith.constant 0 : index
    %506 = vector.load %arg6[%c1_205, %c1_206, %c0_207] : memref<2x18x18xf32, #tpu.memory_space<vmem>>, vector<1x16x16xf32>
    %507 = vector.shape_cast %506 : vector<1x16x16xf32> to vector<16x16xf32>
    %508 = vector.broadcast %501 : f32 to vector<16x16xf32>
    %509 = arith.mulf %508, %507 : vector<16x16xf32>
    %510 = arith.addf %495, %509 : vector<16x16xf32>
    %511 = vector.broadcast %505 : f32 to vector<16x16xf32>
    %512 = arith.mulf %511, %507 : vector<16x16xf32>
    %513 = arith.addf %498, %512 : vector<16x16xf32>
    %c13_i32_208 = arith.constant 13 : i32
    %514 = arith.addi %320, %c13_i32_208 : i32
    %515 = arith.index_cast %514 : i32 to index
    %516 = memref.load %arg2[%515] : memref<72xf32, #tpu.memory_space<smem>>
    %c18_i32_209 = arith.constant 18 : i32
    %517 = arith.addi %320, %c18_i32_209 : i32
    %c13_i32_210 = arith.constant 13 : i32
    %518 = arith.addi %517, %c13_i32_210 : i32
    %519 = arith.index_cast %518 : i32 to index
    %520 = memref.load %arg2[%519] : memref<72xf32, #tpu.memory_space<smem>>
    %c1_211 = arith.constant 1 : index
    %c1_212 = arith.constant 1 : index
    %c1_213 = arith.constant 1 : index
    %521 = vector.load %arg6[%c1_211, %c1_212, %c1_213] : memref<2x18x18xf32, #tpu.memory_space<vmem>>, vector<1x16x16xf32>
    %522 = vector.shape_cast %521 : vector<1x16x16xf32> to vector<16x16xf32>
    %523 = vector.broadcast %516 : f32 to vector<16x16xf32>
    %524 = arith.mulf %523, %522 : vector<16x16xf32>
    %525 = arith.addf %510, %524 : vector<16x16xf32>
    %526 = vector.broadcast %520 : f32 to vector<16x16xf32>
    %527 = arith.mulf %526, %522 : vector<16x16xf32>
    %528 = arith.addf %513, %527 : vector<16x16xf32>
    %c14_i32_214 = arith.constant 14 : i32
    %529 = arith.addi %320, %c14_i32_214 : i32
    %530 = arith.index_cast %529 : i32 to index
    %531 = memref.load %arg2[%530] : memref<72xf32, #tpu.memory_space<smem>>
    %c18_i32_215 = arith.constant 18 : i32
    %532 = arith.addi %320, %c18_i32_215 : i32
    %c14_i32_216 = arith.constant 14 : i32
    %533 = arith.addi %532, %c14_i32_216 : i32
    %534 = arith.index_cast %533 : i32 to index
    %535 = memref.load %arg2[%534] : memref<72xf32, #tpu.memory_space<smem>>
    %c1_217 = arith.constant 1 : index
    %c1_218 = arith.constant 1 : index
    %c2_219 = arith.constant 2 : index
    %536 = vector.load %arg6[%c1_217, %c1_218, %c2_219] : memref<2x18x18xf32, #tpu.memory_space<vmem>>, vector<1x16x16xf32>
    %537 = vector.shape_cast %536 : vector<1x16x16xf32> to vector<16x16xf32>
    %538 = vector.broadcast %531 : f32 to vector<16x16xf32>
    %539 = arith.mulf %538, %537 : vector<16x16xf32>
    %540 = arith.addf %525, %539 : vector<16x16xf32>
    %541 = vector.broadcast %535 : f32 to vector<16x16xf32>
    %542 = arith.mulf %541, %537 : vector<16x16xf32>
    %543 = arith.addf %528, %542 : vector<16x16xf32>
    %c15_i32_220 = arith.constant 15 : i32
    %544 = arith.addi %320, %c15_i32_220 : i32
    %545 = arith.index_cast %544 : i32 to index
    %546 = memref.load %arg2[%545] : memref<72xf32, #tpu.memory_space<smem>>
    %c18_i32_221 = arith.constant 18 : i32
    %547 = arith.addi %320, %c18_i32_221 : i32
    %c15_i32_222 = arith.constant 15 : i32
    %548 = arith.addi %547, %c15_i32_222 : i32
    %549 = arith.index_cast %548 : i32 to index
    %550 = memref.load %arg2[%549] : memref<72xf32, #tpu.memory_space<smem>>
    %c1_223 = arith.constant 1 : index
    %c2_224 = arith.constant 2 : index
    %c0_225 = arith.constant 0 : index
    %551 = vector.load %arg6[%c1_223, %c2_224, %c0_225] : memref<2x18x18xf32, #tpu.memory_space<vmem>>, vector<1x16x16xf32>
    %552 = vector.shape_cast %551 : vector<1x16x16xf32> to vector<16x16xf32>
    %553 = vector.broadcast %546 : f32 to vector<16x16xf32>
    %554 = arith.mulf %553, %552 : vector<16x16xf32>
    %555 = arith.addf %540, %554 : vector<16x16xf32>
    %556 = vector.broadcast %550 : f32 to vector<16x16xf32>
    %557 = arith.mulf %556, %552 : vector<16x16xf32>
    %558 = arith.addf %543, %557 : vector<16x16xf32>
    %c16_i32_226 = arith.constant 16 : i32
    %559 = arith.addi %320, %c16_i32_226 : i32
    %560 = arith.index_cast %559 : i32 to index
    %561 = memref.load %arg2[%560] : memref<72xf32, #tpu.memory_space<smem>>
    %c18_i32_227 = arith.constant 18 : i32
    %562 = arith.addi %320, %c18_i32_227 : i32
    %c16_i32_228 = arith.constant 16 : i32
    %563 = arith.addi %562, %c16_i32_228 : i32
    %564 = arith.index_cast %563 : i32 to index
    %565 = memref.load %arg2[%564] : memref<72xf32, #tpu.memory_space<smem>>
    %c1_229 = arith.constant 1 : index
    %c2_230 = arith.constant 2 : index
    %c1_231 = arith.constant 1 : index
    %566 = vector.load %arg6[%c1_229, %c2_230, %c1_231] : memref<2x18x18xf32, #tpu.memory_space<vmem>>, vector<1x16x16xf32>
    %567 = vector.shape_cast %566 : vector<1x16x16xf32> to vector<16x16xf32>
    %568 = vector.broadcast %561 : f32 to vector<16x16xf32>
    %569 = arith.mulf %568, %567 : vector<16x16xf32>
    %570 = arith.addf %555, %569 : vector<16x16xf32>
    %571 = vector.broadcast %565 : f32 to vector<16x16xf32>
    %572 = arith.mulf %571, %567 : vector<16x16xf32>
    %573 = arith.addf %558, %572 : vector<16x16xf32>
    %c17_i32_232 = arith.constant 17 : i32
    %574 = arith.addi %320, %c17_i32_232 : i32
    %575 = arith.index_cast %574 : i32 to index
    %576 = memref.load %arg2[%575] : memref<72xf32, #tpu.memory_space<smem>>
    %c18_i32_233 = arith.constant 18 : i32
    %577 = arith.addi %320, %c18_i32_233 : i32
    %c17_i32_234 = arith.constant 17 : i32
    %578 = arith.addi %577, %c17_i32_234 : i32
    %579 = arith.index_cast %578 : i32 to index
    %580 = memref.load %arg2[%579] : memref<72xf32, #tpu.memory_space<smem>>
    %c1_235 = arith.constant 1 : index
    %c2_236 = arith.constant 2 : index
    %c2_237 = arith.constant 2 : index
    %581 = vector.load %arg6[%c1_235, %c2_236, %c2_237] : memref<2x18x18xf32, #tpu.memory_space<vmem>>, vector<1x16x16xf32>
    %582 = vector.shape_cast %581 : vector<1x16x16xf32> to vector<16x16xf32>
    %583 = vector.broadcast %576 : f32 to vector<16x16xf32>
    %584 = arith.mulf %583, %582 : vector<16x16xf32>
    %585 = arith.addf %570, %584 : vector<16x16xf32>
    %586 = vector.broadcast %580 : f32 to vector<16x16xf32>
    %587 = arith.mulf %586, %582 : vector<16x16xf32>
    %588 = arith.addf %573, %587 : vector<16x16xf32>
    %c2_i32_238 = arith.constant 2 : i32
    %589 = arith.muli %c2_i32_238, %314 : i32
    %590 = arith.index_cast %589 : i32 to index
    %591 = memref.load %arg3[%590] : memref<4xf32, #tpu.memory_space<smem>>
    %592 = vector.broadcast %591 : f32 to vector<16x16xf32>
    %593 = arith.addf %585, %592 : vector<16x16xf32>
    %594 = vector.extract_strided_slice %318 {offsets = [0, 0, 0], sizes = [1, 16, 16], strides = [1, 1, 1]} : vector<2x16x16xf32> to vector<1x16x16xf32>
    %595 = vector.shape_cast %594 : vector<1x16x16xf32> to vector<16x16xf32>
    %596 = arith.addf %593, %595 : vector<16x16xf32>
    %c1_i32_239 = arith.constant 1 : i32
    %597 = arith.addi %589, %c1_i32_239 : i32
    %598 = arith.index_cast %597 : i32 to index
    %599 = memref.load %arg3[%598] : memref<4xf32, #tpu.memory_space<smem>>
    %600 = vector.broadcast %599 : f32 to vector<16x16xf32>
    %601 = arith.addf %588, %600 : vector<16x16xf32>
    %602 = vector.extract_strided_slice %318 {offsets = [1, 0, 0], sizes = [1, 16, 16], strides = [1, 1, 1]} : vector<2x16x16xf32> to vector<1x16x16xf32>
    %603 = vector.shape_cast %602 : vector<1x16x16xf32> to vector<16x16xf32>
    %604 = arith.addf %601, %603 : vector<16x16xf32>
    %605 = vector.shape_cast %596 : vector<16x16xf32> to vector<1x16x16xf32>
    %c2_i32_240 = arith.constant 2 : i32
    %606 = arith.muli %c2_i32_240, %c1_i32_120 : i32
    %c0_241 = arith.constant 0 : index
    %607 = arith.index_cast %606 : i32 to index
    %c0_242 = arith.constant 0 : index
    %c0_243 = arith.constant 0 : index
    %608 = vector.load %arg5[%c0_241, %607, %c0_242, %c0_243] : memref<1x4x16x16xf32, #tpu.memory_space<vmem>>, vector<1x1x16x16xf32>
    %609 = vector.shape_cast %608 : vector<1x1x16x16xf32> to vector<1x16x16xf32>
    %610 = vector.shape_cast %605 : vector<1x16x16xf32> to vector<1x1x16x16xf32>
    tpu.vector_store %arg5[%c0_241, %607, %c0_242, %c0_243], %610 {strides = array<i32>} : memref<1x4x16x16xf32, #tpu.memory_space<vmem>>, vector<1x1x16x16xf32>,
    %611 = vector.shape_cast %604 : vector<16x16xf32> to vector<1x16x16xf32>
    %c2_i32_244 = arith.constant 2 : i32
    %612 = arith.muli %c2_i32_244, %c1_i32_120 : i32
    %c1_i32_245 = arith.constant 1 : i32
    %613 = arith.addi %612, %c1_i32_245 : i32
    %c0_246 = arith.constant 0 : index
    %614 = arith.index_cast %613 : i32 to index
    %c0_247 = arith.constant 0 : index
    %c0_248 = arith.constant 0 : index
    %615 = vector.load %arg5[%c0_246, %614, %c0_247, %c0_248] : memref<1x4x16x16xf32, #tpu.memory_space<vmem>>, vector<1x1x16x16xf32>
    %616 = vector.shape_cast %615 : vector<1x1x16x16xf32> to vector<1x16x16xf32>
    %617 = vector.shape_cast %611 : vector<1x16x16xf32> to vector<1x1x16x16xf32>
    tpu.vector_store %arg5[%c0_246, %614, %c0_247, %c0_248], %617 {strides = array<i32>} : memref<1x4x16x16xf32, #tpu.memory_space<vmem>>, vector<1x1x16x16xf32>,
    %c2_i32_249 = arith.constant 2 : i32
    return
  }
  func.func @transform_0(%arg0: i32, %arg1: i32) -> i32 {
    %c0_i32 = arith.constant 0 : i32
    %c0_i32_0 = arith.constant 0 : i32
    return %c0_i32 : i32
  }
  func.func @transform_1(%arg0: i32, %arg1: i32) -> i32 {
    %c0_i32 = arith.constant 0 : i32
    %c0_i32_0 = arith.constant 0 : i32
    return %c0_i32 : i32
  }
  func.func @transform_2(%arg0: i32, %arg1: i32) -> (i32, i32, i32, i32) {
    %c0_i32 = arith.constant 0 : i32
    %c0_i32_0 = arith.constant 0 : i32
    %c0_i32_1 = arith.constant 0 : i32
    return %arg0, %arg1, %c0_i32, %c0_i32_0 : i32, i32, i32, i32
  }
  func.func @transform_3(%arg0: i32, %arg1: i32) -> (i32, i32, i32, i32) {
    %c0_i32 = arith.constant 0 : i32
    %c0_i32_0 = arith.constant 0 : i32
    %c0_i32_1 = arith.constant 0 : i32
    return %arg0, %arg1, %c0_i32, %c0_i32_0 : i32, i32, i32, i32
  }
}

</mosaic_0001>

<bundles_post_ra>
// kernel: tpu_custom_call.1
= control target key start
LH: loop header
LB: loop body
LE: loop exit
PB: predicated region body
PF: predicated region fallthrough
CT: control target
= control target key end

     0   :  { %s2359_s0 = inlined_call_operand.hbm [shape: f32[72], index: 0, kind: input, shape index: {}]   ;;  %s2360_s1 = inlined_call_operand.hbm [shape: f32[4], index: 1, kind: input, shape index: {}]   ;;  %s2361_s2 = inlined_call_operand.hbm [shape: f32[2,4,16,16], index: 2, kind: input, shape index: {}]   ;;  %s2362_s3 = inlined_call_operand.hbm [shape: f32[2,4,16,16], index: 3, kind: output, shape index: {}]  }
   0x1   :  { %2363 = sst [smem:[#allocation15_spill]] %s2359_s0 }
   0x2   :  { %8 = vsyncpa [#allocation6], 0 }
   0x3   :  { %9 = vsyncpa [#allocation8], 0 }
   0x4   :  { %10 = vsyncpa [#allocation4], 0 }
   0x5   :  { %12 = vsyncpa [#allocation4 + $0x1], 0 }
   0x6   :  { %13 = vsyncpa [#allocation5], 0 }
   0x7   :  { %15 = vsyncpa [#allocation5 + $0x1], 0  ;;  %s1763_s12 = smov 0   ;;  %s1765_s13 = smov 0  }
   0x8   :  { %s1767_s14 = smov 0   ;;  %s1769_s15 = smov 0  }
   0x9   :  { %s1771_s16 = smov 0   ;;  %s1773_s17 = smov 0  }
   0xa LB: > { %s1385_s18 = sadd.s32 4294967295, %s1731_s17   ;;  %s1386_s19 = sadd.s32 4294967294, %s1731_s17   ;;  %s1731_s17 = sphi %s1773_s17, %s21_s17   ;;  %s1727_s16 = sphi %s1771_s16, %s2376_s16   ;;  %s1723_s15 = sphi %s1769_s15, %s2375_s15   ;;  %s1719_s14 = sphi %s1767_s14, %s2374_s14   ;;  %s1715_s13 = sphi %s1765_s13, %s2373_s13   ;;  %s1711_s12 = sphi %s1763_s12, %s2372_s12  }
   0xb   : > { %s84_s20 = sadd.s32 1, %s1719_s14  ;;  %p91_p0 = scmp.ne.s32.totalorder %s1719_s14, %s1715_s13 }
   0xc   : > { %p92_p1 = scmp.eq.s32.totalorder %s1731_s17, 0  ;;  %p97_p2 = scmp.ne.s32.totalorder %s1715_s13, %s1711_s12 }
   0xd   : > { %p1801_p3 = scmp.eq.s32.totalorder %s1385_s18, 0  ;;  %p123_p4 = scmp.eq.s32.totalorder %s1385_s18, 1 }
   0xe   : > { %p1805_p5 = por %p92_p1, %p91_p0  ;;  %p129_p6 = scmp.eq.s32.totalorder %s1386_s19, 1 }
   0xf   : > { %p1811_p7 = por %p1801_p3, %p97_p2  ;;  %p1815_p8 = por %p123_p4, %p91_p0 }
  0x10   : > { %p1819_p9 = por %p129_p6, %p97_p2  ;;  %p1387_p10 = scmp.ge.s32.totalorder %s1731_s17, 1 }
  0x11   : > { %p136_p11 = scmp.lt.s32.totalorder %s1731_s17, 3  ;;  %s2369_s0 = sld [smem:[#allocation15_spill]] }
  0x12   : > { %p1390_p13 = scmp.ge.s32.totalorder %s1731_s17, 2  ;;  %p1519_p0 = scmp.lt.s32.totalorder %s1731_s17, 2 }
  0x13   : > { %p1828_p12 = pnand %p1387_p10, %p136_p11  ;;  %s158_s5 = sshll.u32 %s2360_s1, 4  ;;  %s159_s5 = int_to_ptr.hbm [resolvable:$true] %s158_s5 }
  0x14   : > { %p1841_p2 = pnand %p1519_p0, %p1805_p5  ;;  %s1733_s7 = smov [#allocation3]  }
  0x15   : > { %p1502_p1 = pneg %p1828_p12  ;;  %s1734_s8 = smov [#allocation7]  }
  0x16   : > { %s33_s9 = sadd.s32 1, %s1727_s16  ;;  %s169_s10 = sand.u32 1, %s1719_s14  }
  0x17   : > { %s148_s28 = sshll.u32 %s2369_s0, 4  ;;  %p1503_p4 = pnand %p1502_p1, %p1801_p3  ;;  %s149_s28 = int_to_ptr.hbm [resolvable:$true] %s148_s28 }
  0x18   : > { %p35_p6 = scmp.ge.s32.totalorder %s33_s9, 2  ;;  %s1391_s11 = sshll.u32 %s169_s10, 6 }
  0x19   : > { %1505 = dma.hbm_to_smem (!%p1503_p4), %s149_s28, 16, %s1733_s7, [#allocation6]  }
  0x1a   : > { %1508 = dma.hbm_to_smem (!%p1503_p4), %s159_s5, 16, %s1734_s8, [#allocation8]  }
  0x1b   : > { %s1488_s18 = sshll.u32 %s1727_s16, 6  ;;  %s2378_s9 = smov (%p35_p6, %s33_s9), 0 }
  0x1c   : > { %s181_s26 = scalar_lea.hbm %s2361_s2, %s1488_s18  ;;  %s79_s27 = ssub.s32 %s1727_s16, %s2378_s9 }
  0x1d   : > { %s182_s30 = sshll.u32 %s181_s26, 4  ;;  %p82_p5 = scmp.eq.s32.totalorder %s79_s27, 0  ;;  %s183_s30 = int_to_ptr.hbm [resolvable:$true] %s182_s30 }
  0x1e   : > { %s173_s28 = scalar_lea.vmem [#allocation9], %s1391_s11  ;;  %s170_s7 = scalar_lea.sflag [#allocation4], %s169_s10 }
  0x1f   : > { %s184_s4 = sshll.u32 %s173_s28, 4  ;;  %s1735_s8 = smov 128   ;;  %s185_s4 = int_to_ptr.vmem [resolvable:$true] %s184_s4 }
  0x20   : > { %s1860_s5 = scalar_select %p82_p5, %s1719_s14, %s84_s20  }
  0x21   : > { %s1736_s0 = smov 8   ;;  %196 = sbr.rel (%p1828_p12) target bundleno = 672 (0x2a0), region = 32 }
  0x22   : > { %1512 = dma.hbm_to_vmem [thread:$0]  (!%p1841_p2), %s183_s30, 1024, %s185_s4, %s170_s7, %s1735_s8, %s1735_s8, %s1736_s0  }
  0x26   : > { %1694 = dma.done.wait (%p1801_p3), [#allocation6], 16  }
  0x27   : > { %1696 = vsyncadd (%p1801_p3), [#allocation6], 4294967280 }
  0x28   : > { %1698 = dma.done.wait (%p1801_p3), [#allocation8], 16  }
  0x29   : > { %1700 = vsyncadd (%p1801_p3), [#allocation8], 4294967280  ;;  %s1875_s20 = sand.u32 1, %s1715_s13  }
  0x2a   : > { %s1397_s0 = sshll.u32 %s1875_s20, 6  ;;  %s209_s29 = scalar_lea.sflag [#allocation4], %s1875_s20 }
  0x2b   : > { %s1881_s6 = scalar_lea.vmem [#allocation9], %s1397_s0 }
  0x2c   : > { %1702 = dma.done.wait (%p1811_p7), %s209_s29, 1024  }
  0x2d   : > { %1704 = vsyncadd (%p1811_p7), %s209_s29, 4294966272 }
  0x2e   : > { %218 = sfence }
  0x2f   : > { %v1888_v0 = vld [vmem:[%s1881_s6] sm:$0xff]  ;;  %v1891_v1 = vld [vmem:[%s1881_s6 + $0x10] sm:$0xff]  ;;  %s1737_s21 = smov 1   ;;  %v1898_v2 = vld [vmem:[%s1881_s6 + $0x8] sm:$0xff]  ;;  %vm239_vm0 = vcmask 139264   ;;  %v1738_v4 = vmov 0.0  }
  0x30   : > { %268 = vrot.lane.b32.xlu0 %v1888_v0, %s1737_s21  ;;  %272 = vrot.lane.b32.xlu1 %v1891_v1, %s1737_s21  ;;  %v1901_v3 = vld [vmem:[%s1881_s6 + $0x18] sm:$0xff]  ;;  %240 = vst.msk [vmem:[#allocation2] sm:$0x1] %vm239_vm0, %v1738_v4  ;;  %vm244_vm1 = vcmask 7168   ;;  %vm252_vm2 = vcmask 146568   ;;  %vm247_vm3 = vcmask 1024  }
  0x31   : > { %245 = vst.msk [vmem:[#allocation2] sm:$0xff] %vm244_vm1, %v1738_v4  ;;  %vm255_vm4 = vcmask 140424   ;;  %s1401_s23 = sld [smem:[#allocation3 + $0x13]]  ;;  %vm280_vm5 = vcmask 138248   ;;  %s1739_s18 = smov 127   ;;  %vm752_vm6 = vcmask 130048  }
  0x32   : > { %246 = vst.msk [vmem:[#allocation2 + $0x8] sm:$0xff] %vm244_vm1, %v1738_v4  ;;  %s1400_s10 = sld [smem:[#allocation3 + $0x1]]  ;;  %s1740_s26 = smov 126  }
  0x33   : > { %253 = vst.msk [vmem:[#allocation2] sm:$0xff] %vm252_vm2, %v1738_v4  ;;  %s1402_s11 = sld [smem:[#allocation3 + $0x2]] }
  0x34   : > { %254 = vst.msk [vmem:[#allocation2 + $0x8] sm:$0xff] %vm252_vm2, %v1738_v4  ;;  %s1915_s19 = sld [smem:[#allocation3 + $0x14]] }
  0x35   : > { %241 = vst.msk [vmem:[#allocation2 + $0x18] sm:$0x1] %vm239_vm0, %v1738_v4  ;;  %s1406_s22 = sld [smem:[#allocation3 + $0x4]] }
  0x36   : > { %242 = vst.msk [vmem:[#allocation2 + $0x11] sm:$0x1] %vm239_vm0, %v1738_v4  ;;  %s1407_s27 = sld [smem:[#allocation3 + $0x16]] }
  0x37   : > { %243 = vst.msk [vmem:[#allocation2 + $0x29] sm:$0x1] %vm239_vm0, %v1738_v4  ;;  %v314_v6 = vstv %s1401_s23  ;;  %s1408_s30 = sld [smem:[#allocation3 + $0x5]] }
  0x38   : > { %270 = vrot.lane.b32.xlu0 %v1898_v2, %s1737_s21  ;;  %274 = vrot.lane.b32.xlu1 %v1901_v3, %s1737_s21  ;;  %250 = vst.msk [vmem:[#allocation2 + $0x20] sm:$0xff] %vm244_vm1, %v1738_v4  ;;  %v301_v7 = vstv %s1400_s10  ;;  %s1409_s28 = sld [smem:[#allocation3 + $0x17]] }
  0x39   : > { %248 = vst.msk [vmem:[#allocation2 + $0x10] sm:$0x3] %vm247_vm3, %v1738_v4  ;;  %v331_v13 = vstv %s1402_s11  ;;  %s1412_s4 = sld [smem:[#allocation3 + $0x7]] }
  0x3a   : > { %256 = vst.msk [vmem:[#allocation2 + $0x10] sm:$0x3] %vm255_vm4, %v1738_v4  ;;  %v344_v18 = vstv %s1915_s19  ;;  %s1413_s7 = sld [smem:[#allocation3 + $0x19]] }
  0x3b   : > { %249 = vst.msk [vmem:[#allocation2 + $0x18] sm:$0xff] %vm244_vm1, %v1738_v4  ;;  %v377_v20 = vstv %s1406_s22  ;;  %s1414_s8 = sld [smem:[#allocation3 + $0x8]] }
  0x3c   : > { %251 = vst.msk [vmem:[#allocation2 + $0x28] sm:$0x3] %vm247_vm3, %v1738_v4  ;;  %v390_v26 = vstv %s1407_s27  ;;  %s1415_s29 = sld [smem:[#allocation3 + $0x1a]] }
  0x3d   : > { %258 = vst.msk [vmem:[#allocation2 + $0x20] sm:$0xff] %vm252_vm2, %v1738_v4  ;;  %v407_v30 = vstv %s1408_s30  ;;  %s1418_s23 = sld [smem:[#allocation3 + $0xa]] }
  0x3e   : > { %257 = vst.msk [vmem:[#allocation2 + $0x18] sm:$0xff] %vm252_vm2, %v1738_v4  ;;  %v420_v31 = vstv %s1409_s28  ;;  %s1419_s10 = sld [smem:[#allocation3 + $0x1c]] }
  0x3f   : > { %259 = vst.msk [vmem:[#allocation2 + $0x28] sm:$0x3] %vm255_vm4, %v1738_v4  ;;  %v453_v36 = vstv %s1412_s4  ;;  %s1420_s11 = sld [smem:[#allocation3 + $0xb]] }
  0x40   : > { %v466_v41 = vstv %s1413_s7  ;;  %s1421_s19 = sld [smem:[#allocation3 + $0x1d]] }
  0x41   : > { %v483_v42 = vstv %s1414_s8  ;;  %s1424_s22 = sld [smem:[#allocation3 + $0xd]] }
  0x42   : > { %v496_v46 = vstv %s1415_s29  ;;  %s1425_s27 = sld [smem:[#allocation3 + $0x1f]] }
  0x43   : > { %v530_v51 = vstv %s1418_s23  ;;  %s1426_s30 = sld [smem:[#allocation3 + $0xe]] }
  0x44   : > { %v543_v52 = vstv %s1419_s10  ;;  %s1427_s28 = sld [smem:[#allocation3 + $0x20]] }
  0x45   : > { %v560_v57 = vstv %s1420_s11  ;;  %s2004_s4 = sld [smem:[#allocation3]] }
  0x46   : > { %v573_v61 = vstv %s1421_s19  ;;  %s1430_s7 = sld [smem:[#allocation3 + $0x10]] }
  0x47   : > { %v606_v63 = vstv %s1424_s22  ;;  %s2012_s8 = sld [smem:[#allocation3 + $0x22]] }
  0x48   : > { %s1432_s29 = sld [smem:[#allocation3 + $0x11]] }
  0x49   : > { %s2027_s23 = sld [smem:[#allocation3 + $0x23]] }
  0x4a   : > { %s1399_s10 = sld [smem:[#allocation3 + $0x12]] }
  0x4b   : > { %s2035_s11 = sld [smem:[#allocation3 + $0x3]] }
  0x4c   : > { %s1405_s19 = sld [smem:[#allocation3 + $0x15]] }
  0x4d   : > { %s2062_s22 = sld [smem:[#allocation3 + $0x6]] }
  0xa2   : > { %v269_v5 = vpop.permute.xlu0 %268  ;;  %v273_v17 = vpop.permute.xlu1 %272 }
  0xa3   : > { %281 = vst.msk [vmem:[#allocation2 + $0x1] sm:$0xff] %vm280_vm5, %v269_v5 }
  0xa4   : > { %283 = vst.msk [vmem:[#allocation2 + $0x19] sm:$0xff] %vm280_vm5, %v273_v17 }
  0xaa   : > { %v271_v8 = vpop.permute.xlu0 %270  ;;  %v1908_v9 = vld [vmem:[#allocation2] sm:$0xff]  ;;  %v275_v24 = vpop.permute.xlu1 %274 }
  0xab   : > { %282 = vst.msk [vmem:[#allocation2 + $0x9] sm:$0xff] %vm280_vm5, %v271_v8  ;;  %v315_v10 = vmul.f32 %v314_v6, %v1908_v9  ;;  %v302_v11 = vmul.f32 %v301_v7, %v1908_v9  ;;  %v1927_v19 = vld [vmem:[#allocation2 + $0x1] sm:$0xff]  ;;  %v345_v21 = vmul.f32 %v344_v18, %v1908_v9  ;;  %v332_v23 = vmul.f32 %v331_v13, %v1908_v9  ;;  %v1972_v50 = vld [vmem:[#allocation2 + $0x18] sm:$0xff] }
  0xac   : > { %v378_v22 = vmul.f32 %v377_v20, %v1927_v19  ;;  %284 = vst.msk [vmem:[#allocation2 + $0x21] sm:$0xff] %vm280_vm5, %v275_v24  ;;  %v408_v32 = vmul.f32 %v407_v30, %v1927_v19  ;;  %v421_v33 = vmul.f32 %v420_v31, %v1927_v19  ;;  %v391_v34 = vmul.f32 %v390_v26, %v1927_v19  ;;  %v1988_v62 = vld [vmem:[#allocation2 + $0x19] sm:$0xff] }
  0xad   : > { %319 = vrot.lane.b32.xlu0 %v315_v10, %s1739_s18  ;;  %306 = vrot.lane.b32.xlu2 %v302_v11, %s1739_s18  ;;  %v531_v53 = vmul.f32 %v530_v51, %v1972_v50  ;;  %v544_v54 = vmul.f32 %v543_v52, %v1972_v50  ;;  %v574_v4 = vmul.f32 %v573_v61, %v1972_v50  ;;  %v619_v8 = vstv %s1425_s27  ;;  %s2067_s27 = sld [smem:[#allocation3 + $0x18]] }
  0xae   : > { %v607_v5 = vmul.f32 %v606_v63, %v1988_v62  ;;  %v682_v24 = vstv %s1430_s7  ;;  %s2102_s7 = sld [smem:[#allocation3 + $0x21]] }
  0xb2   : > { %v1917_v12 = vld [vmem:[#allocation2 + $0x8] sm:$0xff] }
  0xb3   : > { %v303_v14 = vmul.f32 %v301_v7, %v1917_v12  ;;  %v316_v15 = vmul.f32 %v314_v6, %v1917_v12  ;;  %v333_v16 = vmul.f32 %v331_v13, %v1917_v12  ;;  %v1936_v25 = vld [vmem:[#allocation2 + $0x9] sm:$0xff]  ;;  %v346_v29 = vmul.f32 %v344_v18, %v1917_v12  ;;  %v1980_v56 = vld [vmem:[#allocation2 + $0x20] sm:$0xff] }
  0xb4   : > { %v379_v27 = vmul.f32 %v377_v20, %v1936_v25  ;;  %v392_v28 = vmul.f32 %v390_v26, %v1936_v25  ;;  %v1950_v35 = vld [vmem:[#allocation2 + $0xa] sm:$0xff]  ;;  %v422_v37 = vmul.f32 %v420_v31, %v1936_v25  ;;  %v409_v39 = vmul.f32 %v407_v30, %v1936_v25  ;;  %v1958_v40 = vld [vmem:[#allocation2 + $0x2] sm:$0xff] }
  0xb5   : > { %321 = vrot.lane.b32.xlu1 %v316_v15, %s1739_s18  ;;  %338 = vrot.lane.b32.xlu0 %v333_v16, %s1740_s26  ;;  %v455_v38 = vmul.f32 %v453_v36, %v1950_v35  ;;  %v467_v43 = vmul.f32 %v466_v41, %v1958_v40  ;;  %v484_v44 = vmul.f32 %v483_v42, %v1958_v40  ;;  %v1996_v7 = vld [vmem:[#allocation2 + $0x21] sm:$0xff]  ;;  %v636_v15 = vstv %s1426_s30  ;;  %s2082_s30 = sld [smem:[#allocation3 + $0x1b]] }
  0xb6   : > { %308 = vrot.lane.b32.xlu2 %v303_v14, %s1739_s18  ;;  %v454_v45 = vmul.f32 %v453_v36, %v1958_v40  ;;  %v485_v47 = vmul.f32 %v483_v42, %v1950_v35  ;;  %v498_v48 = vmul.f32 %v496_v46, %v1950_v35  ;;  %v468_v49 = vmul.f32 %v466_v41, %v1950_v35 }
  0xb7   : > { %v497_v55 = vmul.f32 %v496_v46, %v1958_v40  ;;  %v545_v58 = vmul.f32 %v543_v52, %v1980_v56  ;;  %v562_v59 = vmul.f32 %v560_v57, %v1980_v56  ;;  %v532_v60 = vmul.f32 %v530_v51, %v1980_v56 }
  0xb8   : > { %v561_v6 = vmul.f32 %v560_v57, %v1972_v50  ;;  %v608_v10 = vmul.f32 %v606_v63, %v1996_v7  ;;  %v621_v11 = vmul.f32 %v619_v8, %v1996_v7  ;;  %v575_v13 = vmul.f32 %v573_v61, %v1980_v56 }
  0xb9   : > { %v649_v16 = vstv %s1427_s28  ;;  %v637_v17 = vmul.f32 %v636_v15, %v1988_v62  ;;  %v620_v20 = vmul.f32 %v619_v8, %v1988_v62  ;;  %s2092_s28 = sld [smem:[#allocation3 + $0x1e]] }
  0xba   : > { %v650_v18 = vmul.f32 %v649_v16, %v1988_v62  ;;  %v651_v26 = vmul.f32 %v649_v16, %v1996_v7  ;;  %v2058_v16 = vld [vmem:[%s1881_s6 + $0x28] sm:$0xff] }
  0xbd   : > { %349 = vrot.lane.b32.xlu1 %v345_v21, %s1740_s26  ;;  %382 = vrot.lane.b32.xlu0 %v378_v22, %s1739_s18  ;;  %v2014_v22 = vld [vmem:[#allocation2 + $0x22] sm:$0xff] }
  0xbe   : > { %336 = vrot.lane.b32.xlu2 %v332_v23, %s1740_s26  ;;  %v291_v23 = vstv %s2004_s4  ;;  %s2096_s4 = sld [smem:[#allocation3 + $0xf]] }
  0xbf   : > { %v293_v46 = vmul.f32 %v291_v23, %v1917_v12 }
  0xc5   : > { %384 = vrot.lane.b32.xlu1 %v379_v27, %s1739_s18  ;;  %397 = vrot.lane.b32.xlu0 %v392_v28, %s1739_s18  ;;  %v684_v27 = vmul.f32 %v682_v24, %v2014_v22  ;;  %v638_v28 = vmul.f32 %v636_v15, %v1996_v7 }
  0xc6   : > { %351 = vrot.lane.b32.xlu2 %v346_v29, %s1740_s26  ;;  %v292_v29 = vmul.f32 %v291_v23, %v1908_v9 }
  0xcd   : > { %412 = vrot.lane.b32.xlu1 %v408_v32, %s1740_s26  ;;  %425 = vrot.lane.b32.xlu0 %v421_v33, %s1740_s26  ;;  %v2024_v32 = vld [vmem:[#allocation2 + $0x1a] sm:$0xff]  ;;  %v695_v33 = vstv %s2012_s8  ;;  %s2106_s8 = sld [smem:[#allocation7]] }
  0xce   : > { %395 = vrot.lane.b32.xlu2 %v391_v34, %s1739_s18  ;;  %v712_v34 = vstv %s1432_s29  ;;  %s2112_s29 = sld [smem:[#allocation7 + $0x1]] }
  0xd5   : > { %427 = vrot.lane.b32.xlu1 %v422_v37, %s1740_s26  ;;  %460 = vrot.lane.b32.xlu0 %v455_v38, %s1739_s18  ;;  %v696_v37 = vmul.f32 %v695_v33, %v2024_v32  ;;  %v713_v38 = vmul.f32 %v712_v34, %v2024_v32 }
  0xd6   : > { %414 = vrot.lane.b32.xlu2 %v409_v39, %s1740_s26  ;;  %v683_v39 = vmul.f32 %v682_v24, %v2024_v32 }
  0xdd   : > { %471 = vrot.lane.b32.xlu1 %v467_v43, %s1739_s18  ;;  %488 = vrot.lane.b32.xlu0 %v484_v44, %s1740_s26  ;;  %v725_v43 = vstv %s2027_s23  ;;  %v714_v44 = vmul.f32 %v712_v34, %v2014_v22  ;;  %s2124_s23 = scalar_lea.vmem [#allocation10], %s1397_s0  ;;  %s1444_s0 = sld [smem:[#allocation3 + $0x37]] }
  0xde   : > { %458 = vrot.lane.b32.xlu2 %v454_v45, %s1739_s18  ;;  %v727_v45 = vmul.f32 %v725_v43, %v2014_v22  ;;  %v726_v63 = vmul.f32 %v725_v43, %v2024_v32 }
  0xe5   : > { %490 = vrot.lane.b32.xlu1 %v485_v47, %s1740_s26  ;;  %503 = vrot.lane.b32.xlu0 %v498_v48, %s1740_s26  ;;  %v697_v47 = vmul.f32 %v695_v33, %v2014_v22  ;;  %v294_v48 = vstv %s1399_s10  ;;  %s1443_s10 = sld [smem:[#allocation3 + $0x25]] }
  0xe6   : > { %473 = vrot.lane.b32.xlu2 %v468_v49, %s1739_s18  ;;  %v296_v51 = vmul.f32 %v294_v48, %v1917_v12  ;;  %v295_v61 = vmul.f32 %v294_v48, %v1908_v9  ;;  %v368_v12 = vstv %s1405_s19  ;;  %v2076_v48 = vld [vmem:[%s1881_s6 + $0x30] sm:$0xff]  ;;  %s1449_s19 = sld [smem:[#allocation3 + $0x28]] }
  0xed   : > { %535 = vrot.lane.b32.xlu1 %v531_v53, %s1739_s18  ;;  %548 = vrot.lane.b32.xlu0 %v544_v54, %s1739_s18 }
  0xee   : > { %501 = vrot.lane.b32.xlu2 %v497_v55, %s1740_s26 }
  0xf5   : > { %550 = vrot.lane.b32.xlu1 %v545_v58, %s1739_s18  ;;  %567 = vrot.lane.b32.xlu0 %v562_v59, %s1740_s26  ;;  %v363_v58 = vstv %s2035_s11  ;;  %s1445_s11 = sld [smem:[#allocation3 + $0x26]] }
  0xf6   : > { %537 = vrot.lane.b32.xlu2 %v532_v60, %s1739_s18  ;;  %v2048_v60 = vld [vmem:[%s1881_s6 + $0x20] sm:$0xff] }
  0xfd   : > { %578 = vrot.lane.b32.xlu1 %v574_v4, %s1740_s26  ;;  %611 = vrot.lane.b32.xlu0 %v607_v5, %s1739_s18  ;;  %v364_v4 = vmul.f32 %v363_v58, %v1927_v19 }
  0xfe   : > { %565 = vrot.lane.b32.xlu2 %v561_v6, %s1740_s26 }
 0x105   : > { %613 = vrot.lane.b32.xlu1 %v608_v10, %s1739_s18  ;;  %626 = vrot.lane.b32.xlu0 %v621_v11, %s1739_s18  ;;  %v369_v11 = vmul.f32 %v368_v12, %v1927_v19 }
 0x106   : > { %580 = vrot.lane.b32.xlu2 %v575_v13, %s1740_s26 }
 0x107   : > { %v307_v14 = vpop.permute.xlu2 %306 }
 0x108   : > { %v312_v30 = vadd.f32 %v307_v14, %v292_v29 }
 0x10d   : > { %641 = vrot.lane.b32.xlu1 %v637_v17, %s1740_s26  ;;  %654 = vrot.lane.b32.xlu0 %v650_v18, %s1740_s26  ;;  %v365_v17 = vmul.f32 %v363_v58, %v1936_v25  ;;  %v370_v18 = vmul.f32 %v368_v12, %v1936_v25 }
 0x10e   : > { %624 = vrot.lane.b32.xlu2 %v620_v20, %s1739_s18 }
 0x110   : > { %v309_v21 = vpop.permute.xlu2 %308 }
 0x111   : > { %v313_v49 = vadd.f32 %v309_v21, %v293_v46 }
 0x115   : > { %656 = vrot.lane.b32.xlu1 %v651_v26, %s1740_s26  ;;  %689 = vrot.lane.b32.xlu0 %v684_v27, %s1739_s18 }
 0x116   : > { %643 = vrot.lane.b32.xlu2 %v638_v28, %s1740_s26 }
 0x118   : > { %v337_v31 = vpop.permute.xlu2 %336 }
 0x119   : > { %v342_v36 = vadd.f32 %v337_v31, %v312_v30  ;;  %v439_v30 = vstv %s2062_s22  ;;  %s1446_s22 = sld [smem:[#allocation3 + $0x38]] }
 0x11a   : > { %v440_v33 = vmul.f32 %v439_v30, %v1958_v40 }
 0x11b   : > { %v366_v6 = vadd.f32 %v364_v4, %v342_v36 }
 0x11d   : > { %700 = vrot.lane.b32.xlu1 %v696_v37, %s1739_s18  ;;  %717 = vrot.lane.b32.xlu0 %v713_v38, %s1740_s26 }
 0x11e   : > { %687 = vrot.lane.b32.xlu2 %v683_v39, %s1739_s18  ;;  %v444_v39 = vstv %s2067_s27  ;;  %s1450_s27 = sld [smem:[#allocation3 + $0x3a]] }
 0x11f   : > { %v320_v41 = vpop.permute.xlu0 %319  ;;  %v446_v43 = vmul.f32 %v444_v39, %v1950_v35 }
 0x120   : > { %v352_v42 = vpop.permute.xlu2 %351  ;;  %v325_v5 = vadd.f32 %v320_v41, %v295_v61 }
 0x125   : > { %719 = vrot.lane.b32.xlu1 %v714_v44, %s1740_s26  ;;  %732 = vrot.lane.b32.xlu0 %v727_v45, %s1740_s26 }
 0x126   : > { %702 = vrot.lane.b32.xlu2 %v697_v47, %s1739_s18  ;;  %v2073_v47 = vld [vmem:[%s1881_s6 + $0x38] sm:$0xff]  ;;  %s1416_s6 = sld [smem:[#allocation3 + $0x9]] }
 0x127   : > { %v322_v52 = vpop.permute.xlu1 %321  ;;  %v339_v53 = vpop.permute.xlu0 %338 }
 0x128   : > { %v326_v54 = vadd.f32 %v322_v52, %v296_v51  ;;  %v343_v55 = vadd.f32 %v339_v53, %v313_v49  ;;  %v396_v57 = vpop.permute.xlu2 %395 }
 0x12a   : > { %v356_v59 = vadd.f32 %v352_v42, %v326_v54  ;;  %v367_v21 = vadd.f32 %v365_v17, %v343_v55  ;;  %v441_v17 = vmul.f32 %v439_v30, %v1950_v35 }
 0x12c   : > { %v372_v23 = vadd.f32 %v370_v18, %v356_v59 }
 0x12d   : > { %769 = vrot.lane.b32.xlu1 %v2048_v60, %s1737_s21  ;;  %773 = vrot.lane.b32.xlu0 %v2076_v48, %s1737_s21 }
 0x12e   : > { %730 = vrot.lane.b32.xlu2 %v726_v63, %s1740_s26 }
 0x12f   : > { %v350_v8 = vpop.permute.xlu1 %349  ;;  %v383_v10 = vpop.permute.xlu0 %382 }
 0x130   : > { %v355_v13 = vadd.f32 %v350_v8, %v325_v5  ;;  %v388_v14 = vadd.f32 %v383_v10, %v366_v6  ;;  %v415_v15 = vpop.permute.xlu2 %414  ;;  %v445_v10 = vmul.f32 %v444_v39, %v1958_v40 }
 0x132   : > { %v371_v9 = vadd.f32 %v369_v11, %v355_v13 }
 0x134   : > { %v401_v20 = vadd.f32 %v396_v57, %v371_v9 }
 0x135   : > { %775 = vrot.lane.b32.xlu1 %v2073_v47, %s1737_s21 }
 0x136   : > { %771 = vrot.lane.b32.xlu2 %v2058_v16, %s1737_s21  ;;  %s2087_s21 = sld [smem:[#allocation3 + $0xc]] }
 0x137   : > { %v385_v19 = vpop.permute.xlu1 %384  ;;  %v398_v24 = vpop.permute.xlu0 %397 }
 0x138   : > { %v389_v26 = vadd.f32 %v385_v19, %v367_v21  ;;  %v402_v27 = vadd.f32 %v398_v24, %v372_v23  ;;  %v459_v28 = vpop.permute.xlu2 %458 }
 0x13a   : > { %v419_v29 = vadd.f32 %v415_v15, %v389_v26 }
 0x13c   : > { %v443_v19 = vadd.f32 %v441_v17, %v419_v29  ;;  %v592_v30 = vstv %s2087_s21  ;;  %s1455_s21 = sld [smem:[#allocation3 + $0x2b]] }
 0x13f   : > { %v413_v25 = vpop.permute.xlu1 %412  ;;  %v426_v31 = vpop.permute.xlu0 %425 }
 0x140   : > { %v418_v34 = vadd.f32 %v413_v25, %v388_v14  ;;  %v474_v36 = vpop.permute.xlu2 %473  ;;  %v431_v5 = vadd.f32 %v426_v31, %v401_v20  ;;  %v516_v14 = vstv %s1416_s6  ;;  %v521_v20 = vstv %s2082_s30  ;;  %s1452_s6 = sld [smem:[#allocation3 + $0x3b]] }
 0x141   : > { %v517_v18 = vmul.f32 %v516_v14, %v1972_v50  ;;  %v522_v25 = vmul.f32 %v521_v20, %v1972_v50  ;;  %v523_v29 = vmul.f32 %v521_v20, %v1980_v56  ;;  %v593_v50 = vmul.f32 %v592_v30, %v1988_v62  ;;  %s1451_s30 = sld [smem:[#allocation3 + $0x29]] }
 0x142   : > { %v442_v37 = vadd.f32 %v440_v33, %v418_v34  ;;  %v447_v13 = vadd.f32 %v445_v10, %v431_v5  ;;  %v518_v34 = vmul.f32 %v516_v14, %v1980_v56 }
 0x144   : > { %v464_v38 = vadd.f32 %v459_v28, %v442_v37 }
 0x147   : > { %v428_v41 = vpop.permute.xlu1 %427  ;;  %v461_v42 = vpop.permute.xlu0 %460 }
 0x148   : > { %v432_v44 = vadd.f32 %v428_v41, %v402_v27  ;;  %v502_v45 = vpop.permute.xlu2 %501  ;;  %v465_v27 = vadd.f32 %v461_v42, %v443_v19 }
 0x14a   : > { %v448_v46 = vadd.f32 %v446_v43, %v432_v44 }
 0x14c   : > { %v478_v49 = vadd.f32 %v474_v36, %v448_v46 }
 0x14f   : > { %v472_v51 = vpop.permute.xlu1 %471  ;;  %v489_v52 = vpop.permute.xlu0 %488 }
 0x150   : > { %v538_v53 = vpop.permute.xlu2 %537  ;;  %v477_v15 = vadd.f32 %v472_v51, %v447_v13  ;;  %v494_v9 = vadd.f32 %v489_v52, %v464_v38  ;;  %v597_v38 = vstv %s2092_s28  ;;  %s1457_s28 = sld [smem:[#allocation3 + $0x2c]] }
 0x151   : > { %v599_v13 = vmul.f32 %v597_v38, %v1996_v7 }
 0x152   : > { %v507_v40 = vadd.f32 %v502_v45, %v477_v15  ;;  %v519_v24 = vadd.f32 %v517_v18, %v494_v9 }
 0x154   : > { %v524_v35 = vadd.f32 %v522_v25, %v507_v40 }
 0x157   : > { %v491_v54 = vpop.permute.xlu1 %490  ;;  %v504_v55 = vpop.permute.xlu0 %503 }
 0x158   : > { %v566_v57 = vpop.permute.xlu2 %565  ;;  %v495_v31 = vadd.f32 %v491_v54, %v465_v27  ;;  %v508_v33 = vadd.f32 %v504_v55, %v478_v49  ;;  %v598_v49 = vmul.f32 %v597_v38, %v1988_v62  ;;  %v668_v55 = vstv %s2096_s4  ;;  %s1456_s4 = sld [smem:[#allocation3 + $0x3d]] }
 0x15a   : > { %v520_v42 = vadd.f32 %v518_v34, %v495_v31  ;;  %v525_v43 = vadd.f32 %v523_v29, %v508_v33 }
 0x15c   : > { %v542_v52 = vadd.f32 %v538_v53, %v520_v42  ;;  %v673_v53 = vstv %s2102_s7  ;;  %s1458_s7 = sld [smem:[#allocation3 + $0x3e]] }
 0x15d   : > { %v674_v18 = vmul.f32 %v673_v53, %v2024_v32 }
 0x15f   : > { %v536_v58 = vpop.permute.xlu1 %535  ;;  %v549_v59 = vpop.permute.xlu0 %548 }
 0x160   : > { %v581_v61 = vpop.permute.xlu2 %580  ;;  %v541_v28 = vadd.f32 %v536_v58, %v519_v24  ;;  %v554_v37 = vadd.f32 %v549_v59, %v524_v35  ;;  %v740_v24 = vstv %s2106_s8  ;;  %v747_v35 = vstv %s2112_s29  ;;  %s1462_s8 = sld [smem:[#allocation3 + $0x40]] }
 0x161   : > { %s1461_s29 = sld [smem:[#allocation3 + $0x2e]] }
 0x162   : > { %v571_v36 = vadd.f32 %v566_v57, %v541_v28  ;;  %v675_v28 = vmul.f32 %v673_v53, %v2014_v22 }
 0x164   : > { %v595_v51 = vadd.f32 %v593_v50, %v571_v36 }
 0x167   : > { %v551_v63 = vpop.permute.xlu1 %550  ;;  %v568_v4 = vpop.permute.xlu0 %567 }
 0x168   : > { %v625_v12 = vpop.permute.xlu2 %624  ;;  %v555_v46 = vadd.f32 %v551_v63, %v525_v43  ;;  %v572_v58 = vadd.f32 %v568_v4, %v542_v52  ;;  %v669_v63 = vmul.f32 %v668_v55, %v2024_v32  ;;  %v670_v32 = vmul.f32 %v668_v55, %v2014_v22 }
 0x169   : > { %v831_v52 = vstv %s1445_s11  ;;  %s1464_s11 = sld [smem:[#allocation3 + $0x41]] }
 0x16a   : > { %v585_v57 = vadd.f32 %v581_v61, %v555_v46 }
 0x16c   : > { %v601_v61 = vadd.f32 %v599_v13, %v585_v57 }
 0x16f   : > { %v579_v6 = vpop.permute.xlu1 %578  ;;  %v612_v8 = vpop.permute.xlu0 %611 }
 0x170   : > { %v2085_v11 = vpop.permute.xlu2 %643  ;;  %v584_v44 = vadd.f32 %v579_v6, %v554_v37  ;;  %v617_v56 = vadd.f32 %v612_v8, %v595_v51  ;;  %v594_v6 = vmul.f32 %v592_v30, %v1996_v7 }
 0x172   : > { %v600_v54 = vadd.f32 %v598_v49, %v584_v44  ;;  %v596_v8 = vadd.f32 %v594_v6, %v572_v58  ;;  %v877_v58 = vstv %s1449_s19  ;;  %s1468_s19 = sld [smem:[#allocation3 + $0x43]] }
 0x174   : > { %v630_v62 = vadd.f32 %v625_v12, %v600_v54 }
 0x177   : > { %v614_v21 = vpop.permute.xlu1 %613  ;;  %v627_v23 = vpop.permute.xlu0 %626 }
 0x178   : > { %v688_v26 = vpop.permute.xlu2 %687  ;;  %v618_v9 = vadd.f32 %v614_v21, %v596_v8  ;;  %v631_v17 = vadd.f32 %v627_v23, %v601_v61 }
 0x17a   : > { %v648_v12 = vadd.f32 %v2085_v11, %v618_v9 }
 0x17f   : > { %v642_v39 = vpop.permute.xlu1 %641  ;;  %v655_v41 = vpop.permute.xlu0 %654 }
 0x180   : > { %v703_v45 = vpop.permute.xlu2 %702  ;;  %v647_v59 = vadd.f32 %v642_v39, %v617_v56  ;;  %v660_v15 = vadd.f32 %v655_v41, %v630_v62 }
 0x182   : > { %v671_v4 = vadd.f32 %v669_v63, %v647_v59  ;;  %v676_v19 = vadd.f32 %v674_v18, %v660_v15  ;;  %v844_v59 = vstv %s1446_s22  ;;  %v890_v63 = vstv %s1450_s27  ;;  %s2220_s22 = sld [smem:[#allocation3 + $0x24]] }
 0x183   : > { %v907_v15 = vstv %s1451_s30  ;;  %s2226_s27 = sld [smem:[#allocation3 + $0x44]] }
 0x184   : > { %v693_v7 = vadd.f32 %v688_v26, %v671_v4  ;;  %v672_v26 = vadd.f32 %v670_v32, %v648_v12  ;;  %v920_v4 = vstv %s1452_s6  ;;  %v983_v12 = vstv %s1457_s28  ;;  %s1469_s6 = sld [smem:[#allocation3 + $0x32]] }
 0x185   : > { %s2233_s30 = sld [smem:[#allocation3 + $0x36]] }
 0x186   : > { %s2249_s28 = sld [smem:[#allocation3 + $0x35]] }
 0x187   : > { %v657_v5 = vpop.permute.xlu1 %656  ;;  %v690_v10 = vpop.permute.xlu0 %689 }
 0x188   : > { %v731_v14 = vpop.permute.xlu2 %730  ;;  %v661_v20 = vadd.f32 %v657_v5, %v631_v17  ;;  %v694_v11 = vadd.f32 %v690_v10, %v672_v26  ;;  %v1042_v26 = vstv %s1462_s8  ;;  %s1476_s8 = sld [smem:[#allocation3 + $0x47]] }
 0x18a   : > { %v677_v21 = vadd.f32 %v675_v28, %v661_v20  ;;  %v966_v28 = vstv %s1456_s4  ;;  %s1474_s4 = sld [smem:[#allocation3 + $0x46]] }
 0x18c   : > { %v707_v37 = vadd.f32 %v703_v45, %v677_v21  ;;  %v801_v45 = vstv %s1443_s10  ;;  %s1467_s10 = sld [smem:[#allocation3 + $0x31]] }
 0x18f   : > { %v701_v40 = vpop.permute.xlu1 %700  ;;  %v718_v27 = vpop.permute.xlu0 %717 }
 0x190   : > { %v706_v25 = vadd.f32 %v701_v40, %v676_v19  ;;  %v723_v31 = vadd.f32 %v718_v27, %v693_v7  ;;  %v772_v33 = vpop.permute.xlu2 %771  ;;  %v953_v19 = vstv %s1455_s21  ;;  %s1473_s21 = sld [smem:[#allocation3 + $0x34]] }
 0x191   : > { %782 = vst.msk [vmem:[#allocation2 + $0x9] sm:$0xff] %vm280_vm5, %v772_v33 }
 0x192   : > { %v736_v23 = vadd.f32 %v731_v14, %v706_v25  ;;  %v741_v30 = vadd.f32 %v740_v24, %v723_v31 }
 0x194   : > { %v743_v34 = vadd.f32 %v741_v30, %v1888_v0  ;;  %v748_v36 = vadd.f32 %v747_v35, %v736_v23 }
 0x196   : > { %753 = vst.msk [vmem:[%s2124_s23] sm:$0xff] %vm752_vm6, %v743_v34  ;;  %v750_v22 = vadd.f32 %v748_v36, %v1891_v1  ;;  %v814_v1 = vstv %s1444_s0  ;;  %v1029_v34 = vstv %s1461_s29  ;;  %s1463_s0 = sld [smem:[#allocation3 + $0x2f]] }
 0x197   : > { %v720_v29 = vpop.permute.xlu1 %719  ;;  %v733_v38 = vpop.permute.xlu0 %732  ;;  %s1447_s29 = sld [smem:[#allocation3 + $0x27]] }
 0x198   : > { %v724_v39 = vadd.f32 %v720_v29, %v694_v11  ;;  %v737_v41 = vadd.f32 %v733_v38, %v707_v37  ;;  %1435 = vst.msk [vmem:[%s2124_s23 + $0x10] sm:$0xff] %vm752_vm6, %v750_v22  ;;  %v2162_v13 = vld [vmem:[#allocation2 + $0x9] sm:$0xff] }
 0x199   : > { %v892_v53 = vmul.f32 %v890_v63, %v2162_v13  ;;  %v879_v8 = vmul.f32 %v877_v58, %v2162_v13  ;;  %v909_v18 = vmul.f32 %v907_v15, %v2162_v13  ;;  %v2178_v20 = vld [vmem:[#allocation2 + $0xa] sm:$0xff] }
 0x19a   : > { %v742_v0 = vadd.f32 %v740_v24, %v724_v39  ;;  %v749_v42 = vadd.f32 %v747_v35, %v737_v41  ;;  %v955_v40 = vmul.f32 %v953_v19, %v2178_v20  ;;  %v922_v24 = vmul.f32 %v920_v4, %v2162_v13 }
 0x19b   : > { %v968_v33 = vmul.f32 %v966_v28, %v2178_v20  ;;  %v996_v35 = vstv %s1458_s7  ;;  %v985_v32 = vmul.f32 %v983_v12, %v2178_v20  ;;  %s2261_s7 = sld [smem:[#allocation3 + $0x39]] }
 0x19c   : > { %v744_v43 = vadd.f32 %v742_v0, %v1898_v2  ;;  %v751_v44 = vadd.f32 %v749_v42, %v1901_v3  ;;  %v998_v21 = vmul.f32 %v996_v35, %v2178_v20  ;;  %v1059_v29 = vstv %s1463_s0  ;;  %s1454_s0 = sld [smem:[#allocation3 + $0x3c]] }
 0x19d   : > { %v1105_v42 = vstv %s1467_s10  ;;  %s1460_s10 = sld [smem:[#allocation3 + $0x3f]] }
 0x19e   : > { %754 = vst.msk [vmem:[%s2124_s23 + $0x8] sm:$0xff] %vm752_vm6, %v744_v43  ;;  %v1072_v43 = vstv %s1464_s11  ;;  %s2292_s11 = sld [smem:[#allocation3 + $0x42]] }
 0x19f   : > { %1436 = vst.msk [vmem:[%s2124_s23 + $0x18] sm:$0xff] %vm752_vm6, %v751_v44  ;;  %v770_v50 = vpop.permute.xlu1 %769  ;;  %v774_v14 = vpop.permute.xlu0 %773 }
 0x1a0   : > { %781 = vst.msk [vmem:[#allocation2 + $0x1] sm:$0xff] %vm280_vm5, %v770_v50 }
 0x1a1   : > { %783 = vst.msk [vmem:[#allocation2 + $0x19] sm:$0xff] %vm280_vm5, %v774_v14 }
 0x1a7   : > { %v2138_v46 = vld [vmem:[#allocation2] sm:$0xff]  ;;  %v2140_v49 = vld [vmem:[#allocation2 + $0x8] sm:$0xff]  ;;  %v776_v62 = vpop.permute.xlu1 %775 }
 0x1a8   : > { %v815_v2 = vmul.f32 %v814_v1, %v2138_v46  ;;  %v802_v3 = vmul.f32 %v801_v45, %v2138_v46  ;;  %v803_v51 = vmul.f32 %v801_v45, %v2140_v49  ;;  %v833_v54 = vmul.f32 %v831_v52, %v2140_v49  ;;  %v2154_v57 = vld [vmem:[#allocation2 + $0x1] sm:$0xff]  ;;  %784 = vst.msk [vmem:[#allocation2 + $0x21] sm:$0xff] %vm280_vm5, %v776_v62  ;;  %v2200_v30 = vld [vmem:[#allocation2 + $0x18] sm:$0xff] }
 0x1a9   : > { %v816_v56 = vmul.f32 %v814_v1, %v2140_v49  ;;  %v832_v55 = vmul.f32 %v831_v52, %v2138_v46  ;;  %v878_v5 = vmul.f32 %v877_v58, %v2154_v57  ;;  %v845_v10 = vmul.f32 %v844_v59, %v2138_v46  ;;  %v2180_v7 = vld [vmem:[#allocation2 + $0x2] sm:$0xff]  ;;  %v2216_v0 = vld [vmem:[#allocation2 + $0x19] sm:$0xff] }
 0x1aa   : > { %819 = vrot.lane.b32.xlu1 %v815_v2, %s1739_s18  ;;  %806 = vrot.lane.b32.xlu2 %v802_v3, %s1739_s18  ;;  %v846_v6 = vmul.f32 %v844_v59, %v2140_v49  ;;  %v891_v61 = vmul.f32 %v890_v63, %v2154_v57  ;;  %v921_v9 = vmul.f32 %v920_v4, %v2154_v57  ;;  %v1118_v2 = vstv %s1468_s19  ;;  %s1465_s19 = sld [smem:[#allocation3 + $0x30]] }
 0x1ab   : > { %808 = vrot.lane.b32.xlu0 %v803_v51, %s1739_s18  ;;  %v908_v17 = vmul.f32 %v907_v15, %v2154_v57  ;;  %v954_v27 = vmul.f32 %v953_v19, %v2180_v7  ;;  %v984_v25 = vmul.f32 %v983_v12, %v2180_v7  ;;  %v967_v31 = vmul.f32 %v966_v28, %v2180_v7 }
 0x1ac   : > { %v997_v23 = vmul.f32 %v996_v35, %v2180_v7  ;;  %v1043_v11 = vmul.f32 %v1042_v26, %v2200_v30  ;;  %v1030_v37 = vmul.f32 %v1029_v34, %v2200_v30  ;;  %v1060_v41 = vmul.f32 %v1059_v29, %v2200_v30 }
 0x1ad   : > { %v1106_v44 = vmul.f32 %v1105_v42, %v2216_v0  ;;  %v1073_v50 = vmul.f32 %v1072_v43, %v2200_v30  ;;  %v791_v52 = vstv %s2220_s22  ;;  %v1148_v59 = vstv %s2226_s27  ;;  %s2298_s22 = sld [smem:[#allocation3 + $0x33]] }
 0x1ae   : > { %v794_v63 = vstv %s2233_s30  ;;  %v1181_v4 = vstv %s1473_s21  ;;  %s1472_s27 = sld [smem:[#allocation3 + $0x45]]  ;;  %s1489_s21 = sshll.u32 %s1723_s15, 6 }
 0x1af   : > { %v2202_v36 = vld [vmem:[#allocation2 + $0x20] sm:$0xff]  ;;  %v796_v14 = vmul.f32 %v794_v63, %v2140_v49  ;;  %s1478_s30 = sld [smem:[#allocation7 + $0x3]]  ;;  %s1273_s15 = sshll.u32 %s2124_s23, 4  ;;  %s1274_s15 = int_to_ptr.vmem [resolvable:$true] %s1273_s15 }
 0x1b0   : > { %v1031_v22 = vmul.f32 %v1029_v34, %v2202_v36  ;;  %v1061_v38 = vmul.f32 %v1059_v29, %v2202_v36  ;;  %v1044_v39 = vmul.f32 %v1042_v26, %v2202_v36  ;;  %v1074_v1 = vmul.f32 %v1072_v43, %v2202_v36  ;;  %v2228_v45 = vld [vmem:[#allocation2 + $0x21] sm:$0xff] }
 0x1b1   : > { %v1120_v3 = vmul.f32 %v1118_v2, %v2228_v45  ;;  %v1107_v51 = vmul.f32 %v1105_v42, %v2228_v45  ;;  %v2253_v15 = vld [vmem:[#allocation2 + $0x1a] sm:$0xff]  ;;  %v1224_v26 = vstv %s1476_s8 }
 0x1b2   : > { %838 = vrot.lane.b32.xlu1 %v833_v54, %s1740_s26  ;;  %821 = vrot.lane.b32.xlu2 %v816_v56, %s1739_s18  ;;  %v1119_v54 = vmul.f32 %v1118_v2, %v2216_v0  ;;  %v792_v56 = vmul.f32 %v791_v52, %v2138_v46 }
 0x1b3   : > { %836 = vrot.lane.b32.xlu0 %v832_v55, %s1740_s26 }
 0x1ba   : > { %882 = vrot.lane.b32.xlu1 %v878_v5, %s1739_s18  ;;  %849 = vrot.lane.b32.xlu2 %v845_v10, %s1740_s26  ;;  %v1135_v5 = vstv %s1469_s6  ;;  %v1149_v10 = vmul.f32 %v1148_v59, %v2216_v0  ;;  %s1477_s6 = sld [smem:[#allocation7 + $0x2]] }
 0x1bb   : > { %851 = vrot.lane.b32.xlu0 %v846_v6, %s1740_s26  ;;  %v1136_v6 = vmul.f32 %v1135_v5, %v2216_v0  ;;  %v1137_v62 = vmul.f32 %v1135_v5, %v2228_v45 }
 0x1c2   : > { %897 = vrot.lane.b32.xlu1 %v892_v53, %s1739_s18  ;;  %884 = vrot.lane.b32.xlu2 %v879_v8, %s1739_s18 }
 0x1c3   : > { %895 = vrot.lane.b32.xlu0 %v891_v61, %s1739_s18  ;;  %v2251_v61 = vld [vmem:[#allocation2 + $0x22] sm:$0xff] }
 0x1ca   : > { %925 = vrot.lane.b32.xlu1 %v921_v9, %s1740_s26  ;;  %912 = vrot.lane.b32.xlu2 %v908_v17, %s1740_s26  ;;  %v1183_v9 = vmul.f32 %v1181_v4, %v2251_v61  ;;  %v1150_v17 = vmul.f32 %v1148_v59, %v2228_v45 }
 0x1cb   : > { %914 = vrot.lane.b32.xlu0 %v909_v18, %s1740_s26  ;;  %v1182_v18 = vmul.f32 %v1181_v4, %v2253_v15 }
 0x1d2   : > { %960 = vrot.lane.b32.xlu1 %v955_v40, %s1739_s18  ;;  %927 = vrot.lane.b32.xlu2 %v922_v24, %s1740_s26  ;;  %v1211_v40 = vstv %s2249_s28  ;;  %v1194_v24 = vstv %s1474_s4 }
 0x1d3   : > { %958 = vrot.lane.b32.xlu0 %v954_v27, %s1739_s18  ;;  %v1212_v27 = vmul.f32 %v1211_v40, %v2253_v15  ;;  %v1195_v12 = vmul.f32 %v1194_v24, %v2253_v15  ;;  %v1196_v28 = vmul.f32 %v1194_v24, %v2251_v61  ;;  %v1213_v29 = vmul.f32 %v1211_v40, %v2251_v61 }
 0x1da   : > { %988 = vrot.lane.b32.xlu1 %v984_v25, %s1740_s26  ;;  %971 = vrot.lane.b32.xlu2 %v967_v31, %s1739_s18  ;;  %v795_v25 = vmul.f32 %v794_v63, %v2138_v46  ;;  %v863_v46 = vstv %s1447_s29  ;;  %s1258_s29 = scalar_lea.sflag [#allocation5], %s1875_s20 }
 0x1db   : > { %973 = vrot.lane.b32.xlu0 %v968_v33, %s1739_s18  ;;  %v793_v33 = vmul.f32 %v791_v52, %v2140_v49  ;;  %v865_v42 = vmul.f32 %v863_v46, %v2162_v13 }
 0x1e2   : > { %1003 = vrot.lane.b32.xlu1 %v998_v21, %s1740_s26  ;;  %990 = vrot.lane.b32.xlu2 %v985_v32, %s1740_s26  ;;  %v868_v21 = vstv %s2261_s7  ;;  %s1272_s7 = scalar_lea.hbm %s2362_s3, %s1489_s21 }
 0x1e3   : > { %1001 = vrot.lane.b32.xlu0 %v997_v23, %s1740_s26  ;;  %s1275_s8 = sshll.u32 %s1272_s7, 4  ;;  %s1276_s8 = int_to_ptr.hbm [resolvable:$true] %s1275_s8 }
 0x1ea   : > { %1047 = vrot.lane.b32.xlu1 %v1043_v11, %s1739_s18  ;;  %1034 = vrot.lane.b32.xlu2 %v1030_v37, %s1739_s18  ;;  %v869_v37 = vmul.f32 %v868_v21, %v2154_v57 }
 0x1eb   : > { %1036 = vrot.lane.b32.xlu0 %v1031_v22, %s1739_s18  ;;  %v1226_v22 = vmul.f32 %v1224_v26, %v2251_v61 }
 0x1f2   : > { %1066 = vrot.lane.b32.xlu1 %v1061_v38, %s1740_s26  ;;  %1049 = vrot.lane.b32.xlu2 %v1044_v39, %s1739_s18  ;;  %v1225_v38 = vmul.f32 %v1224_v26, %v2253_v15 }
 0x1f3   : > { %1064 = vrot.lane.b32.xlu0 %v1060_v41, %s1740_s26 }
 0x1fa   : > { %1110 = vrot.lane.b32.xlu1 %v1106_v44, %s1739_s18  ;;  %1077 = vrot.lane.b32.xlu2 %v1073_v50, %s1740_s26 }
 0x1fb   : > { %1079 = vrot.lane.b32.xlu0 %v1074_v1, %s1740_s26  ;;  %v864_v1 = vmul.f32 %v863_v46, %v2154_v57  ;;  %v944_v57 = vstv %s1454_s0 }
 0x202   : > { %1125 = vrot.lane.b32.xlu1 %v1120_v3, %s1739_s18  ;;  %1112 = vrot.lane.b32.xlu2 %v1107_v51, %s1739_s18 }
 0x203   : > { %1123 = vrot.lane.b32.xlu0 %v1119_v54, %s1739_s18 }
 0x204   : > { %v807_v55 = vpop.permute.xlu2 %806 }
 0x205   : > { %v812_v58 = vadd.f32 %v807_v55, %v792_v56 }
 0x20a   : > { %1153 = vrot.lane.b32.xlu1 %v1149_v10, %s1740_s26  ;;  %1140 = vrot.lane.b32.xlu2 %v1136_v6, %s1740_s26  ;;  %v870_v10 = vmul.f32 %v868_v21, %v2162_v13  ;;  %v945_v13 = vmul.f32 %v944_v57, %v2180_v7 }
 0x20b   : > { %1142 = vrot.lane.b32.xlu0 %v1137_v62, %s1740_s26 }
 0x20c   : > { %v822_v53 = vpop.permute.xlu2 %821 }
 0x20d   : > { %v826_v8 = vadd.f32 %v822_v53, %v796_v14 }
 0x212   : > { %1188 = vrot.lane.b32.xlu1 %v1183_v9, %s1739_s18  ;;  %1155 = vrot.lane.b32.xlu2 %v1150_v17, %s1740_s26 }
 0x213   : > { %1186 = vrot.lane.b32.xlu0 %v1182_v18, %s1739_s18 }
 0x214   : > { %v850_v19 = vpop.permute.xlu2 %849 }
 0x21a   : > { %1216 = vrot.lane.b32.xlu1 %v1212_v27, %s1740_s26  ;;  %1199 = vrot.lane.b32.xlu2 %v1195_v12, %s1739_s18 }
 0x21b   : > { %1201 = vrot.lane.b32.xlu0 %v1196_v28, %s1739_s18  ;;  %s2280_s18 = sld [smem:[#allocation3 + $0x2a]] }
 0x21c   : > { %v820_v31 = vpop.permute.xlu1 %819  ;;  %v885_v35 = vpop.permute.xlu2 %884 }
 0x21d   : > { %v825_v32 = vadd.f32 %v820_v31, %v795_v25  ;;  %v809_v23 = vpop.permute.xlu0 %808 }
 0x21e   : > { %v813_v34 = vadd.f32 %v809_v23, %v793_v33 }
 0x21f   : > { %v855_v11 = vadd.f32 %v850_v19, %v825_v32  ;;  %v946_v19 = vmul.f32 %v944_v57, %v2178_v20 }
 0x221   : > { %v871_v39 = vadd.f32 %v869_v37, %v855_v11  ;;  %v939_v56 = vstv %s2280_s18  ;;  %s1655_s18 = sshra.s32 %s1276_s8, 4  ;;  %s1656_s18 = int_to_ptr.hbm [resolvable:$true] %s1655_s18 }
 0x222   : > { %1231 = vrot.lane.b32.xlu1 %v1226_v22, %s1740_s26  ;;  %1218 = vrot.lane.b32.xlu2 %v1213_v29, %s1740_s26  ;;  %v940_v63 = vmul.f32 %v939_v56, %v2180_v7  ;;  %v941_v25 = vmul.f32 %v939_v56, %v2178_v20  ;;  %s1657_s0 = scalar_lea.hbm %s1656_s18, 64  ;;  %p1662_p11 = scmp.lt.s32.totalorder %s1656_s18, %s2362_s3 }
 0x223   : > { %1229 = vrot.lane.b32.xlu0 %v1225_v38, %s1740_s26  ;;  %s1459_s26 = sld [smem:[#allocation3 + $0x2d]]  ;;  %p1658_p3 = scmp.ne.s32.totalorder %s1656_s18, %s1657_s0 }
 0x224   : > { %v839_v49 = vpop.permute.xlu1 %838  ;;  %v913_v41 = vpop.permute.xlu2 %912 }
 0x225   : > { %v843_v43 = vadd.f32 %v839_v49, %v813_v34  ;;  %v837_v44 = vpop.permute.xlu0 %836  ;;  %p1659_p7 = pnand %p1658_p3, %p1815_p8 }
 0x226   : > { %v842_v50 = vadd.f32 %v837_v44, %v812_v58 }
 0x227   : > { %v867_v2 = vadd.f32 %v865_v42, %v843_v43  ;;  %p1660_p10 = pneg %p1659_p7 }
 0x228   : > { %v866_v3 = vadd.f32 %v864_v1, %v842_v50 }
 0x229   : > { %v889_v51 = vadd.f32 %v885_v35, %v867_v2  ;;  %v1015_v23 = vstv %s1459_s26 }
 0x22a   : > { %v1017_v37 = vmul.f32 %v1015_v23, %v2202_v36 }
 0x22c   : > { %v883_v52 = vpop.permute.xlu1 %882  ;;  %v928_v54 = vpop.permute.xlu2 %927 }
 0x22d   : > { %v888_v55 = vadd.f32 %v883_v52, %v866_v3  ;;  %v852_v59 = vpop.permute.xlu0 %851 }
 0x22e   : > { %v856_v5 = vadd.f32 %v852_v59, %v826_v8 }
 0x22f   : > { %v918_v6 = vadd.f32 %v913_v41, %v888_v55  ;;  %v1020_v41 = vstv %s1460_s10  ;;  %v1096_v55 = vstv %s2292_s11  ;;  %s1661_s11 = scalar_lea.hbm %s2362_s3, 128 }
 0x230   : > { %v872_v62 = vadd.f32 %v870_v10, %v856_v5  ;;  %v1022_v50 = vmul.f32 %v1020_v41, %v2202_v36  ;;  %p1663_p12 = scmp.lt.s32.totalorder %s1661_s11, %s1657_s0 }
 0x231   : > { %v942_v14 = vadd.f32 %v940_v63, %v918_v6  ;;  %v1097_v63 = vmul.f32 %v1096_v55, %v2216_v0 }
 0x232   : > { %p1664_p0 = por %p1663_p12, %p1662_p11 }
 0x234   : > { %v898_v58 = vpop.permute.xlu1 %897  ;;  %v972_v53 = vpop.permute.xlu2 %971  ;;  %p1665_p1 = pnand %p1664_p0, %p1660_p10 }
 0x235   : > { %v902_v4 = vadd.f32 %v898_v58, %v872_v62  ;;  %v896_v9 = vpop.permute.xlu0 %895 }
 0x236   : > { %v901_v17 = vadd.f32 %v896_v9, %v871_v39  ;;  %v1016_v39 = vmul.f32 %v1015_v23, %v2200_v30 }
 0x237   : > { %v932_v18 = vadd.f32 %v928_v54, %v902_v4 }
 0x239   : > { %v948_v40 = vadd.f32 %v946_v19, %v932_v18 }
 0x23c   : > { %v926_v24 = vpop.permute.xlu1 %925  ;;  %v991_v27 = vpop.permute.xlu2 %990 }
 0x23d   : > { %v931_v8 = vadd.f32 %v926_v24, %v901_v17  ;;  %v915_v12 = vpop.permute.xlu0 %914 }
 0x23e   : > { %v919_v28 = vadd.f32 %v915_v12, %v889_v51  ;;  %v1021_v51 = vmul.f32 %v1020_v41, %v2200_v30 }
 0x23f   : > { %v947_v31 = vadd.f32 %v945_v13, %v931_v8  ;;  %v1167_v13 = vstv %s2298_s22 }
 0x240   : > { %v943_v33 = vadd.f32 %v941_v25, %v919_v28  ;;  %v1098_v25 = vmul.f32 %v1096_v55, %v2228_v45  ;;  %v1169_v41 = vmul.f32 %v1167_v13, %v2251_v61 }
 0x241   : > { %v977_v35 = vadd.f32 %v972_v53, %v947_v31 }
 0x244   : > { %v961_v21 = vpop.permute.xlu1 %960  ;;  %v1035_v32 = vpop.permute.xlu2 %1034 }
 0x245   : > { %v965_v26 = vadd.f32 %v961_v21, %v943_v33  ;;  %v959_v34 = vpop.permute.xlu0 %958  ;;  %v1168_v33 = vmul.f32 %v1167_v13, %v2253_v15 }
 0x246   : > { %v964_v29 = vadd.f32 %v959_v34, %v942_v14  ;;  %v1091_v14 = vstv %s1465_s19 }
 0x247   : > { %v995_v11 = vadd.f32 %v991_v27, %v965_v26  ;;  %v1093_v30 = vmul.f32 %v1091_v14, %v2228_v45  ;;  %v1092_v17 = vmul.f32 %v1091_v14, %v2216_v0  ;;  %v1172_v0 = vstv %s1472_s27 }
 0x248   : > { %v1173_v45 = vmul.f32 %v1172_v0, %v2253_v15 }
 0x249   : > { %v1019_v22 = vadd.f32 %v1017_v37, %v995_v11  ;;  %v1174_v37 = vmul.f32 %v1172_v0, %v2251_v61 }
 0x24c   : > { %v989_v7 = vpop.permute.xlu1 %988  ;;  %v1050_v38 = vpop.permute.xlu2 %1049 }
 0x24d   : > { %v994_v46 = vadd.f32 %v989_v7, %v964_v29  ;;  %v974_v20 = vpop.permute.xlu0 %973 }
 0x24e   : > { %v978_v42 = vadd.f32 %v974_v20, %v948_v40 }
 0x24f   : > { %v1018_v49 = vadd.f32 %v1016_v39, %v994_v46 }
 0x251   : > { %v1040_v53 = vadd.f32 %v1035_v32, %v1018_v49 }
 0x254   : > { %v1004_v43 = vpop.permute.xlu1 %1003  ;;  %v1078_v44 = vpop.permute.xlu2 %1077 }
 0x255   : > { %v1008_v1 = vadd.f32 %v1004_v43, %v978_v42  ;;  %v1002_v2 = vpop.permute.xlu0 %1001 }
 0x256   : > { %v1007_v3 = vadd.f32 %v1002_v2, %v977_v35 }
 0x257   : > { %v1024_v52 = vadd.f32 %v1022_v50, %v1008_v1 }
 0x258   : > { %v1023_v54 = vadd.f32 %v1021_v51, %v1007_v3  ;;  %v1239_v3 = vstv %s1477_s6 }
 0x259   : > { %v1054_v27 = vadd.f32 %v1050_v38, %v1024_v52 }
 0x25c   : > { %v1048_v56 = vpop.permute.xlu1 %1047  ;;  %v1113_v10 = vpop.permute.xlu2 %1112 }
 0x25d   : > { %v1053_v59 = vadd.f32 %v1048_v56, %v1023_v54  ;;  %v1037_v5 = vpop.permute.xlu0 %1036 }
 0x25e   : > { %v1041_v58 = vadd.f32 %v1037_v5, %v1019_v22 }
 0x25f   : > { %v1083_v6 = vadd.f32 %v1078_v44, %v1053_v59 }
 0x261   : > { %v1099_v62 = vadd.f32 %v1097_v63, %v1083_v6 }
 0x264   : > { %v1067_v36 = vpop.permute.xlu1 %1066  ;;  %v1141_v19 = vpop.permute.xlu2 %1140 }
 0x265   : > { %v1071_v57 = vadd.f32 %v1067_v36, %v1041_v58  ;;  %v1065_v4 = vpop.permute.xlu0 %1064 }
 0x266   : > { %v1070_v9 = vadd.f32 %v1065_v4, %v1040_v53 }
 0x267   : > { %v1095_v18 = vadd.f32 %v1093_v30, %v1071_v57 }
 0x268   : > { %v1094_v40 = vadd.f32 %v1092_v17, %v1070_v9 }
 0x269   : > { %v1117_v39 = vadd.f32 %v1113_v10, %v1095_v18 }
 0x26c   : > { %v1111_v24 = vpop.permute.xlu1 %1110  ;;  %v1156_v32 = vpop.permute.xlu2 %1155 }
 0x26d   : > { %v1116_v8 = vadd.f32 %v1111_v24, %v1094_v40  ;;  %v1080_v12 = vpop.permute.xlu0 %1079 }
 0x26e   : > { %v1084_v28 = vadd.f32 %v1080_v12, %v1054_v27 }
 0x26f   : > { %v1146_v31 = vadd.f32 %v1141_v19, %v1116_v8 }
 0x270   : > { %v1100_v35 = vadd.f32 %v1098_v25, %v1084_v28 }
 0x271   : > { %v1170_v21 = vadd.f32 %v1168_v33, %v1146_v31 }
 0x274   : > { %v1126_v23 = vpop.permute.xlu1 %1125  ;;  %v1200_v7 = vpop.permute.xlu2 %1199 }
 0x275   : > { %v1130_v26 = vadd.f32 %v1126_v23, %v1100_v35  ;;  %v1124_v34 = vpop.permute.xlu0 %1123 }
 0x276   : > { %v1129_v29 = vadd.f32 %v1124_v34, %v1099_v62 }
 0x277   : > { %v1160_v11 = vadd.f32 %v1156_v32, %v1130_v26 }
 0x279   : > { %v1176_v22 = vadd.f32 %v1174_v37, %v1160_v11 }
 0x27c   : > { %v1154_v38 = vpop.permute.xlu1 %1153  ;;  %v1219_v2 = vpop.permute.xlu2 %1218 }
 0x27d   : > { %v1159_v46 = vadd.f32 %v1154_v38, %v1129_v29  ;;  %v1143_v20 = vpop.permute.xlu0 %1142 }
 0x27e   : > { %v1147_v49 = vadd.f32 %v1143_v20, %v1117_v39 }
 0x27f   : > { %v1175_v42 = vadd.f32 %v1173_v45, %v1159_v46 }
 0x280   : > { %v1171_v43 = vadd.f32 %v1169_v41, %v1147_v49 }
 0x281   : > { %v1205_v63 = vadd.f32 %v1200_v7, %v1175_v42 }
 0x284   : > { %v1189_v44 = vpop.permute.xlu1 %1188 }
 0x285   : > { %v1193_v50 = vadd.f32 %v1189_v44, %v1171_v43  ;;  %v1187_v1 = vpop.permute.xlu0 %1186 }
 0x286   : > { %v1192_v54 = vadd.f32 %v1187_v1, %v1170_v21 }
 0x287   : > { %v1223_v51 = vadd.f32 %v1219_v2, %v1193_v50 }
 0x289   : > { %v1241_v52 = vadd.f32 %v1239_v3, %v1223_v51 }
 0x28b   : > { %v1243_v15 = vadd.f32 %v2058_v16, %v1241_v52  ;;  %v1246_v16 = vstv %s1478_s30 }
 0x28c   : > { %v1217_v56 = vpop.permute.xlu1 %1216 }
 0x28d   : > { %v1222_v61 = vadd.f32 %v1217_v56, %v1192_v54  ;;  %1480 = vst.msk [vmem:[%s2124_s23 + $0x28] sm:$0xff] %vm752_vm6, %v1243_v15  ;;  %v1202_v55 = vpop.permute.xlu0 %1201 }
 0x28e   : > { %v1206_v10 = vadd.f32 %v1202_v55, %v1176_v22 }
 0x28f   : > { %v1240_v59 = vadd.f32 %v1239_v3, %v1222_v61 }
 0x291   : > { %v1242_v5 = vadd.f32 %v2048_v60, %v1240_v59 }
 0x293   : > { %1479 = vst.msk [vmem:[%s2124_s23 + $0x20] sm:$0xff] %vm752_vm6, %v1242_v5 }
 0x294   : > { %v1232_v6 = vpop.permute.xlu1 %1231 }
 0x295   : > { %v1236_v62 = vadd.f32 %v1232_v6, %v1206_v10  ;;  %v1230_v14 = vpop.permute.xlu0 %1229 }
 0x296   : > { %v1235_v58 = vadd.f32 %v1230_v14, %v1205_v63 }
 0x297   : > { %v1248_v60 = vadd.f32 %v1246_v16, %v1236_v62 }
 0x298   : > { %v1247_v36 = vadd.f32 %v1246_v16, %v1235_v58 }
 0x299   : > { %v1250_v53 = vadd.f32 %v2073_v47, %v1248_v60 }
 0x29a   : > { %v1249_v30 = vadd.f32 %v2076_v48, %v1247_v36 }
 0x29b   : > { %1482 = vst.msk [vmem:[%s2124_s23 + $0x38] sm:$0xff] %vm752_vm6, %v1250_v53 }
 0x29c   : > { %1481 = vst.msk [vmem:[%s2124_s23 + $0x30] sm:$0xff] %vm752_vm6, %v1249_v30 }
 0x29d   : > { %1668 = shalt.err (!%p1665_p1)
}
 0x29e   : > { %s1741_s20 = smov 128   ;;  %s1742_s23 = smov 8  }
 0x29f   : > { %1500 = dma.vmem_to_hbm [thread:$0]  (%p1815_p8), %s1274_s15, 1024, %s1276_s8, %s1258_s29, %s1741_s20, %s1741_s20, %s1742_s23  }
 0x2a0 PF: > { %s1290_s27 = sand.u32 1, %s1711_s12   ;;  %p1514_p2 = pnand %p1390_p13, %p1819_p9 }
 0x2a1   : > { %s1291_s6 = scalar_lea.sflag [#allocation5], %s1290_s27 }
 0x2a2   : > { %p1515_p4 = pneg %p1514_p2 }
 0x2a4   : > { %1706 = dma.done.wait (%p1515_p4), %s1291_s6, 1024  }
 0x2a5   : > { %1708 = vsyncadd (%p1515_p4), %s1291_s6, 4294966272  ;;  %s21_s17 = sadd.s32 1, %s1731_s17   ;;  %s2372_s12 = smov %s1715_s13 }
 0x2a6   : > { %p18_p6 = scmp.ge.s32.totalorder %s21_s17, 4   ;;  %s2373_s13 = smov %s1719_s14 }
 0x2a7   : > { %s2374_s14 = smov %s1860_s5  ;;  %s2375_s15 = smov %s1727_s16 }
 0x2a8   : > { %s2376_s16 = smov %s2378_s9  ;;  %20 = sbr.rel (!%p18_p6) target bundleno = 10 (0xa), region = 91 }
 0x2ad   :  { %1297 = vsyncpa [#allocation4], 1 }
 0x2ae   :  { %1299 = vsyncpa [#allocation4 + $0x1], 1 }
 0x2af   :  { %1300 = vsyncpa [#allocation5], 1 }
 0x2b0   :  { %1302 = vsyncpa [#allocation5 + $0x1], 1 }
 0x2b1   :  { %1303 = vsyncpa [#allocation6], 1 }
 0x2b2   :  { %1305 = vsyncpa [#allocation6 + $0x1], 1 }
 0x2b3   :  { %1306 = vsyncpa [#allocation8], 1 }

</bundles_post_ra>
